<compile_context>
chip_gen: v7x
topology: tpu7x:2x2x1
jax: 0.10.0
libtpu: 0.0.40
codegen_flags: <defaults>
</compile_context>

<pallas_src>
import math

import jax
import jax.numpy as jnp
import numpy as np
from jax.experimental import pallas as pl
from jax.experimental.pallas import tpu as pltpu


def _round_up(x, m):
    return (x + m - 1) // m * m


def _choose_tile_bn(BN, L, H, budget_bytes=24 * 1024 * 1024):
    """Largest BN tile (multiple of 8) whose double-buffered blocks fit VMEM."""
    bn_cap = _round_up(BN, 8)
    tile = 512
    while tile > 8:
        # f32 bytes: 2x-buffered gx block + 2x-buffered out block + temporaries.
        need = 4 * (2 * L * tile * 3 * H + 2 * L * tile * H + 6 * tile * H)
        if need <= budget_bytes:
            break
        tile //= 2
    return min(tile, bn_cap)


# -----------------------------------------------------------------------------
# Pallas kernel: one BN tile per grid step; whole time recurrence inside.
# -----------------------------------------------------------------------------
def gru_seq_kernel(gx_ref, whh_ref, bhn_ref, len_ref, out_ref):
    L = gx_ref.shape[0]
    H = whh_ref.shape[0]
    tile_bn = out_ref.shape[1]

    whh = whh_ref[...]              # (H, 3H), possibly bf16
    bhn = bhn_ref[...]              # (1, H) f32  (b_hh for the n gate)
    lens = len_ref[...]             # (tile_bn, 1) int32

    def step(t, h):
        gx_t = gx_ref[t]            # (tile_bn, 3H) lane-dense slab
        # Recurrent matmul on the MXU with f32 accumulation.
        gh = jnp.dot(h.astype(whh.dtype), whh,
                     preferred_element_type=jnp.float32)
        # PyTorch GRU gate order: r, z, n.  b_ih (+ b_hh for r/z) is already
        # folded into gx; only b_hn is applied here, inside the r* term.
        r = jax.nn.sigmoid(gx_t[:, 0 * H:1 * H].astype(jnp.float32)
                           + gh[:, 0 * H:1 * H])
        z = jax.nn.sigmoid(gx_t[:, 1 * H:2 * H].astype(jnp.float32)
                           + gh[:, 1 * H:2 * H])
        n = jnp.tanh(gx_t[:, 2 * H:3 * H].astype(jnp.float32)
                     + r * (gh[:, 2 * H:3 * H] + bhn))
        h_new = n + z * (h - n)                       # == (1-z)*n + z*h

        valid = t < lens                              # (tile_bn, 1) bool
        # pad_packed_sequence semantics: zero the output for t >= length.
        # jnp.where (not *0) so non-finite padding cannot leak through.
        out_ref[t] = jnp.where(valid, h_new, 0.0).astype(out_ref.dtype)
        # Freeze the hidden state past each sequence's length.
        return jnp.where(valid, h_new, h)

    h0 = jnp.zeros((tile_bn, H), jnp.float32)
    jax.lax.fori_loop(0, L, step, h0, unroll=(L <= 16))


# -----------------------------------------------------------------------------
# Wrapper (glue: hoisted input projection, layout transforms, pallas_call)
# -----------------------------------------------------------------------------
def single_stroke_encoder(stroke, params, lengths=None, *,
                          compute_dtype=jnp.float32):
    """stroke: (B, N, L, C) float32 -> (B, N, L, H) float32."""
    B, N, L, C = stroke.shape
    BN = B * N
    H = params["w_hh_t"].shape[0]

    if lengths is None:
        # mask=None in the torch forward -> every stroke has length L
        lengths = jnp.full((BN,), L, dtype=jnp.int32)
    lengths = lengths.reshape(BN).astype(jnp.int32)

    x = stroke.reshape(BN, L, C).astype(jnp.float32)

    # Hoisted input projection: one big MXU-friendly matmul outside the serial
    # recurrence.  Output is time-major (L, BN, 3H) so the kernel reads
    # lane-dense (TILE_BN, 3H) slabs.  b_ih (+ b_hh for r/z) is pre-folded in.
    gx = jnp.einsum("nlc,cg->lng", x, params["w_ih_t"]) + params["b_gx"]

    TILE_BN = _choose_tile_bn(BN, L, H)
    BN_pad = _round_up(max(BN, TILE_BN), TILE_BN)
    if BN_pad != BN:
        gx = jnp.pad(gx, ((0, 0), (0, BN_pad - BN), (0, 0)))
        lengths = jnp.pad(lengths, (0, BN_pad - BN))      # pad rows: length 0
    lengths = lengths.reshape(BN_pad, 1)

    gx = gx.astype(compute_dtype)
    w_hh = params["w_hh_t"].astype(compute_dtype)
    b_hn = params["b_hh_n"].astype(jnp.float32)

    out_tm = pl.pallas_call(
        gru_seq_kernel,
        out_shape=jax.ShapeDtypeStruct((L, BN_pad, H), jnp.float32),
        grid_spec=pltpu.PrefetchScalarGridSpec(
            num_scalar_prefetch=0,
            grid=(BN_pad // TILE_BN,),
            in_specs=[
                pl.BlockSpec((L, TILE_BN, 3 * H), lambda i: (0, i, 0)),  # gx
                pl.BlockSpec((H, 3 * H), lambda i: (0, 0)),              # W_hh^T
                pl.BlockSpec((1, H), lambda i: (0, 0)),                  # b_hn
                pl.BlockSpec((TILE_BN, 1), lambda i: (i, 0)),            # lengths
            ],
            out_specs=pl.BlockSpec((L, TILE_BN, H), lambda i: (0, i, 0)),
        ),
        compiler_params=pltpu.CompilerParams(
            # BN tiles are fully independent -> megacore sharding on v7x.
            dimension_semantics=("parallel",),
            vmem_limit_bytes=32 * 1024 * 1024,
        ),
    )(gx, w_hh, b_hn, lengths)

    return jnp.transpose(out_tm[:, :BN, :], (1, 0, 2)).reshape(B, N, L, H)


# -----------------------------------------------------------------------------
# Deterministic parameter init (same shapes / init range as torch.nn.GRU)
# -----------------------------------------------------------------------------
def init_gru_params(key, input_dim, hidden_dim):
    k = 1.0 / math.sqrt(hidden_dim)
    hd = hidden_dim
    k_wih, k_whh, k_bih, k_bhh = jax.random.split(key, 4)
    w_ih = jax.random.uniform(k_wih, (3 * hd, input_dim), jnp.float32, -k, k)
    w_hh = jax.random.uniform(k_whh, (3 * hd, hd), jnp.float32, -k, k)
    b_ih = jax.random.uniform(k_bih, (3 * hd,), jnp.float32, -k, k)
    b_hh = jax.random.uniform(k_bhh, (3 * hd,), jnp.float32, -k, k)
    # Fold b_hh into the input-projection bias for the r/z gates; keep b_hh's
    # n-gate slice separate (it sits inside the r* term in the GRU formula).
    b_fold = jnp.concatenate([b_ih[:2 * hd] + b_hh[:2 * hd], b_ih[2 * hd:]])
    return {
        "w_ih_t": jnp.transpose(w_ih),               # (C, 3H)
        "w_hh_t": jnp.transpose(w_hh),               # (H, 3H)
        "b_gx": b_fold.reshape(1, 1, 3 * hd),        # folded bias for gx
        "b_hh_n": b_hh[2 * hd:].reshape(1, hd),      # (1, H)
        # raw biases kept for the pure-JAX reference
        "b_ih": b_ih.reshape(1, 3 * hd),
        "b_hh": b_hh.reshape(1, 3 * hd),
    }


# -----------------------------------------------------------------------------
# Pure-JAX reference GRU (for correctness check)
# -----------------------------------------------------------------------------
def gru_reference(stroke, params, lengths):
    B, N, L, C = stroke.shape
    BN = B * N
    H = params["w_hh_t"].shape[0]
    x = stroke.reshape(BN, L, C).astype(jnp.float32)
    lens = lengths.reshape(BN, 1)

    def step(h, xt):
        gx = xt @ params["w_ih_t"] + params["b_ih"]
        gh = h @ params["w_hh_t"] + params["b_hh"]
        r = jax.nn.sigmoid(gx[:, :H] + gh[:, :H])
        z = jax.nn.sigmoid(gx[:, H:2 * H] + gh[:, H:2 * H])
        n = jnp.tanh(gx[:, 2 * H:] + r * gh[:, 2 * H:])
        h_new = (1.0 - z) * n + z * h
        return h_new, h_new

    h0 = jnp.zeros((BN, H), jnp.float32)
    _, hs = jax.lax.scan(step, h0, jnp.transpose(x, (1, 0, 2)))   # (L, BN, H)
    mask = (jnp.arange(L)[:, None, None] < lens[None, :, :]).astype(jnp.float32)
    hs = hs * mask
    return jnp.transpose(hs, (1, 0, 2)).reshape(B, N, L, H)


if __name__ == "__main__":
    B, N, L, C, H = 2, 4, 8, 2, 128    # input_dim=2, d_model=128 (module defaults)

    key = jax.random.PRNGKey(0)
    k_params, k_x = jax.random.split(key, 2)

    params = init_gru_params(k_params, C, H)
    stroke = jax.random.normal(k_x, (B, N, L, C), jnp.float32)

    # lengths as produced by the torch mask path (includes a zero-length stroke
    # to exercise the "invalid stroke -> all-zero rows" branch).
    lengths = jnp.array([L, L, 5, 3, 0, L, 7, 1], dtype=jnp.int32)

    out = jax.block_until_ready(single_stroke_encoder(stroke, params, lengths))
    assert out.shape == (B, N, L, H)

    ref = gru_reference(stroke, params, lengths)
    np.testing.assert_allclose(np.asarray(out), np.asarray(ref),
                               rtol=1e-4, atol=1e-4)

    # mask=None default path (all lengths == L)
    out_full = jax.block_until_ready(single_stroke_encoder(stroke, params))
    ref_full = gru_reference(stroke, params, jnp.full((B * N,), L, jnp.int32))
    np.testing.assert_allclose(np.asarray(out_full), np.asarray(ref_full),
                               rtol=1e-4, atol=1e-4)

    # bf16 recurrent-matmul path (v6e/v7x): bf16 operands, f32 accum + gates.
    out_bf16 = jax.block_until_ready(
        single_stroke_encoder(stroke, params, lengths,
                              compute_dtype=jnp.bfloat16))
    np.testing.assert_allclose(np.asarray(out_bf16), np.asarray(ref),
                               rtol=5e-2, atol=3e-2)

    print("KERNEL_OK")
</pallas_src>

<mosaic_0001>
module attributes {stable_mosaic.version = 11 : i64} {
  func.func @gru_seq_kernel(%arg0: i32, %arg1: memref<8x8x384xf32, #tpu.memory_space<vmem>>, %arg2: memref<128x384xf32, #tpu.memory_space<vmem>>, %arg3: memref<1x128xf32, #tpu.memory_space<vmem>>, %arg4: memref<8x1xi32, #tpu.memory_space<vmem>>, %arg5: memref<8x8x128xf32, #tpu.memory_space<vmem>>) attributes {dimension_semantics = [#tpu.dimension_semantics<parallel>], iteration_bounds = array<i64: 1>, scalar_prefetch = 0 : i64, scratch_operands = 0 : i64, tpu.core_type = #tpu.core_type<tc>, window_params = [{transform_indices = @transform_0, window_bounds = array<i64: 8, 8, 384>}, {pipeline_mode = #tpu.pipeline_mode<synchronous>, transform_indices = @transform_1, window_bounds = array<i64: 128, 384>}, {pipeline_mode = #tpu.pipeline_mode<synchronous>, transform_indices = @transform_2, window_bounds = array<i64: 1, 128>}, {transform_indices = @transform_3, window_bounds = array<i64: 8, 1>}, {transform_indices = @transform_4, window_bounds = array<i64: 8, 8, 128>}]} {
    %c0 = arith.constant 0 : index
    %c0_0 = arith.constant 0 : index
    %0 = vector.load %arg2[%c0, %c0_0] : memref<128x384xf32, #tpu.memory_space<vmem>>, vector<128x384xf32>
    %c0_1 = arith.constant 0 : index
    %c0_2 = arith.constant 0 : index
    %1 = vector.load %arg3[%c0_1, %c0_2] : memref<1x128xf32, #tpu.memory_space<vmem>>, vector<1x128xf32>
    %c0_3 = arith.constant 0 : index
    %c0_4 = arith.constant 0 : index
    %2 = vector.load %arg4[%c0_3, %c0_4] : memref<8x1xi32, #tpu.memory_space<vmem>>, vector<8x1xi32>
    %cst = arith.constant 0.000000e+00 : f32
    %3 = vector.broadcast %cst : f32 to vector<8x128xf32>
    %c0_i32 = arith.constant 0 : i32
    %4 = arith.index_cast %c0_i32 : i32 to index
    %c0_5 = arith.constant 0 : index
    %c0_6 = arith.constant 0 : index
    %5 = vector.load %arg1[%4, %c0_5, %c0_6] : memref<8x8x384xf32, #tpu.memory_space<vmem>>, vector<1x8x384xf32>
    %6 = vector.shape_cast %5 : vector<1x8x384xf32> to vector<8x384xf32>
    %cst_7 = arith.constant dense<0.000000e+00> : vector<8x384xf32>
    %7 = tpu.matmul %3, %0, %cst_7 {dimension_numbers = #tpu.dot_dimension_numbers<[1], [0], [0], [1], [0, 0, 1, 1], [], []>} : vector<8x128xf32>, vector<128x384xf32>, vector<8x384xf32> -> vector<8x384xf32>
    %8 = vector.extract_strided_slice %6 {offsets = [0, 0], sizes = [8, 128], strides = [1, 1]} : vector<8x384xf32> to vector<8x128xf32>
    %9 = vector.extract_strided_slice %7 {offsets = [0, 0], sizes = [8, 128], strides = [1, 1]} : vector<8x384xf32> to vector<8x128xf32>
    %10 = arith.addf %8, %9 : vector<8x128xf32>
    %11 = arith.negf %10 : vector<8x128xf32>
    %12 = math.exp %11 : vector<8x128xf32>
    %cst_8 = arith.constant 1.000000e+00 : f32
    %13 = vector.broadcast %cst_8 : f32 to vector<8x128xf32>
    %14 = arith.addf %13, %12 : vector<8x128xf32>
    %15 = arith.divf %13, %14 : vector<8x128xf32>
    %16 = vector.extract_strided_slice %6 {offsets = [0, 128], sizes = [8, 128], strides = [1, 1]} : vector<8x384xf32> to vector<8x128xf32>
    %17 = vector.extract_strided_slice %7 {offsets = [0, 128], sizes = [8, 128], strides = [1, 1]} : vector<8x384xf32> to vector<8x128xf32>
    %18 = arith.addf %16, %17 : vector<8x128xf32>
    %19 = arith.negf %18 : vector<8x128xf32>
    %20 = math.exp %19 : vector<8x128xf32>
    %cst_9 = arith.constant 1.000000e+00 : f32
    %21 = vector.broadcast %cst_9 : f32 to vector<8x128xf32>
    %22 = arith.addf %21, %20 : vector<8x128xf32>
    %23 = arith.divf %21, %22 : vector<8x128xf32>
    %24 = vector.extract_strided_slice %6 {offsets = [0, 256], sizes = [8, 128], strides = [1, 1]} : vector<8x384xf32> to vector<8x128xf32>
    %25 = vector.extract_strided_slice %7 {offsets = [0, 256], sizes = [8, 128], strides = [1, 1]} : vector<8x384xf32> to vector<8x128xf32>
    %26 = vector.broadcast %1 : vector<1x128xf32> to vector<8x128xf32>
    %27 = arith.addf %25, %26 : vector<8x128xf32>
    %28 = arith.mulf %15, %27 : vector<8x128xf32>
    %29 = arith.addf %24, %28 : vector<8x128xf32>
    %30 = math.tanh %29 : vector<8x128xf32>
    %31 = arith.subf %3, %30 : vector<8x128xf32>
    %32 = arith.mulf %23, %31 : vector<8x128xf32>
    %33 = arith.addf %30, %32 : vector<8x128xf32>
    %34 = vector.broadcast %c0_i32 : i32 to vector<8x1xi32>
    %35 = arith.cmpi slt, %34, %2 : vector<8x1xi32>
    %cst_10 = arith.constant 0.000000e+00 : f32
    %36 = vector.shape_cast %35 : vector<8x1xi1> to vector<8x1xi1>
    %37 = vector.broadcast %36 : vector<8x1xi1> to vector<8x128xi1>
    %38 = vector.broadcast %cst_10 : f32 to vector<8x128xf32>
    %39 = arith.select %37, %33, %38 : vector<8x128xi1>, vector<8x128xf32>
    %40 = arith.index_cast %c0_i32 : i32 to index
    %c0_11 = arith.constant 0 : index
    %c0_12 = arith.constant 0 : index
    %41 = vector.load %arg5[%40, %c0_11, %c0_12] : memref<8x8x128xf32, #tpu.memory_space<vmem>>, vector<1x8x128xf32>
    %42 = vector.shape_cast %41 : vector<1x8x128xf32> to vector<8x128xf32>
    %43 = vector.shape_cast %39 : vector<8x128xf32> to vector<1x8x128xf32>
    tpu.vector_store %arg5[%40, %c0_11, %c0_12], %43 {strides = array<i32>} : memref<8x8x128xf32, #tpu.memory_space<vmem>>, vector<1x8x128xf32>,
    %44 = vector.shape_cast %35 : vector<8x1xi1> to vector<8x1xi1>
    %45 = vector.broadcast %44 : vector<8x1xi1> to vector<8x128xi1>
    %46 = arith.select %45, %33, %3 : vector<8x128xi1>, vector<8x128xf32>
    %c1_i32 = arith.constant 1 : i32
    %47 = arith.index_cast %c1_i32 : i32 to index
    %c0_13 = arith.constant 0 : index
    %c0_14 = arith.constant 0 : index
    %48 = vector.load %arg1[%47, %c0_13, %c0_14] : memref<8x8x384xf32, #tpu.memory_space<vmem>>, vector<1x8x384xf32>
    %49 = vector.shape_cast %48 : vector<1x8x384xf32> to vector<8x384xf32>
    %cst_15 = arith.constant dense<0.000000e+00> : vector<8x384xf32>
    %50 = tpu.matmul %46, %0, %cst_15 {dimension_numbers = #tpu.dot_dimension_numbers<[1], [0], [0], [1], [0, 0, 1, 1], [], []>} : vector<8x128xf32>, vector<128x384xf32>, vector<8x384xf32> -> vector<8x384xf32>
    %51 = vector.extract_strided_slice %49 {offsets = [0, 0], sizes = [8, 128], strides = [1, 1]} : vector<8x384xf32> to vector<8x128xf32>
    %52 = vector.extract_strided_slice %50 {offsets = [0, 0], sizes = [8, 128], strides = [1, 1]} : vector<8x384xf32> to vector<8x128xf32>
    %53 = arith.addf %51, %52 : vector<8x128xf32>
    %54 = arith.negf %53 : vector<8x128xf32>
    %55 = math.exp %54 : vector<8x128xf32>
    %cst_16 = arith.constant 1.000000e+00 : f32
    %56 = vector.broadcast %cst_16 : f32 to vector<8x128xf32>
    %57 = arith.addf %56, %55 : vector<8x128xf32>
    %58 = arith.divf %56, %57 : vector<8x128xf32>
    %59 = vector.extract_strided_slice %49 {offsets = [0, 128], sizes = [8, 128], strides = [1, 1]} : vector<8x384xf32> to vector<8x128xf32>
    %60 = vector.extract_strided_slice %50 {offsets = [0, 128], sizes = [8, 128], strides = [1, 1]} : vector<8x384xf32> to vector<8x128xf32>
    %61 = arith.addf %59, %60 : vector<8x128xf32>
    %62 = arith.negf %61 : vector<8x128xf32>
    %63 = math.exp %62 : vector<8x128xf32>
    %cst_17 = arith.constant 1.000000e+00 : f32
    %64 = vector.broadcast %cst_17 : f32 to vector<8x128xf32>
    %65 = arith.addf %64, %63 : vector<8x128xf32>
    %66 = arith.divf %64, %65 : vector<8x128xf32>
    %67 = vector.extract_strided_slice %49 {offsets = [0, 256], sizes = [8, 128], strides = [1, 1]} : vector<8x384xf32> to vector<8x128xf32>
    %68 = vector.extract_strided_slice %50 {offsets = [0, 256], sizes = [8, 128], strides = [1, 1]} : vector<8x384xf32> to vector<8x128xf32>
    %69 = vector.broadcast %1 : vector<1x128xf32> to vector<8x128xf32>
    %70 = arith.addf %68, %69 : vector<8x128xf32>
    %71 = arith.mulf %58, %70 : vector<8x128xf32>
    %72 = arith.addf %67, %71 : vector<8x128xf32>
    %73 = math.tanh %72 : vector<8x128xf32>
    %74 = arith.subf %46, %73 : vector<8x128xf32>
    %75 = arith.mulf %66, %74 : vector<8x128xf32>
    %76 = arith.addf %73, %75 : vector<8x128xf32>
    %77 = vector.broadcast %c1_i32 : i32 to vector<8x1xi32>
    %78 = arith.cmpi slt, %77, %2 : vector<8x1xi32>
    %cst_18 = arith.constant 0.000000e+00 : f32
    %79 = vector.shape_cast %78 : vector<8x1xi1> to vector<8x1xi1>
    %80 = vector.broadcast %79 : vector<8x1xi1> to vector<8x128xi1>
    %81 = vector.broadcast %cst_18 : f32 to vector<8x128xf32>
    %82 = arith.select %80, %76, %81 : vector<8x128xi1>, vector<8x128xf32>
    %83 = arith.index_cast %c1_i32 : i32 to index
    %c0_19 = arith.constant 0 : index
    %c0_20 = arith.constant 0 : index
    %84 = vector.load %arg5[%83, %c0_19, %c0_20] : memref<8x8x128xf32, #tpu.memory_space<vmem>>, vector<1x8x128xf32>
    %85 = vector.shape_cast %84 : vector<1x8x128xf32> to vector<8x128xf32>
    %86 = vector.shape_cast %82 : vector<8x128xf32> to vector<1x8x128xf32>
    tpu.vector_store %arg5[%83, %c0_19, %c0_20], %86 {strides = array<i32>} : memref<8x8x128xf32, #tpu.memory_space<vmem>>, vector<1x8x128xf32>,
    %87 = vector.shape_cast %78 : vector<8x1xi1> to vector<8x1xi1>
    %88 = vector.broadcast %87 : vector<8x1xi1> to vector<8x128xi1>
    %89 = arith.select %88, %76, %46 : vector<8x128xi1>, vector<8x128xf32>
    %c2_i32 = arith.constant 2 : i32
    %90 = arith.index_cast %c2_i32 : i32 to index
    %c0_21 = arith.constant 0 : index
    %c0_22 = arith.constant 0 : index
    %91 = vector.load %arg1[%90, %c0_21, %c0_22] : memref<8x8x384xf32, #tpu.memory_space<vmem>>, vector<1x8x384xf32>
    %92 = vector.shape_cast %91 : vector<1x8x384xf32> to vector<8x384xf32>
    %cst_23 = arith.constant dense<0.000000e+00> : vector<8x384xf32>
    %93 = tpu.matmul %89, %0, %cst_23 {dimension_numbers = #tpu.dot_dimension_numbers<[1], [0], [0], [1], [0, 0, 1, 1], [], []>} : vector<8x128xf32>, vector<128x384xf32>, vector<8x384xf32> -> vector<8x384xf32>
    %94 = vector.extract_strided_slice %92 {offsets = [0, 0], sizes = [8, 128], strides = [1, 1]} : vector<8x384xf32> to vector<8x128xf32>
    %95 = vector.extract_strided_slice %93 {offsets = [0, 0], sizes = [8, 128], strides = [1, 1]} : vector<8x384xf32> to vector<8x128xf32>
    %96 = arith.addf %94, %95 : vector<8x128xf32>
    %97 = arith.negf %96 : vector<8x128xf32>
    %98 = math.exp %97 : vector<8x128xf32>
    %cst_24 = arith.constant 1.000000e+00 : f32
    %99 = vector.broadcast %cst_24 : f32 to vector<8x128xf32>
    %100 = arith.addf %99, %98 : vector<8x128xf32>
    %101 = arith.divf %99, %100 : vector<8x128xf32>
    %102 = vector.extract_strided_slice %92 {offsets = [0, 128], sizes = [8, 128], strides = [1, 1]} : vector<8x384xf32> to vector<8x128xf32>
    %103 = vector.extract_strided_slice %93 {offsets = [0, 128], sizes = [8, 128], strides = [1, 1]} : vector<8x384xf32> to vector<8x128xf32>
    %104 = arith.addf %102, %103 : vector<8x128xf32>
    %105 = arith.negf %104 : vector<8x128xf32>
    %106 = math.exp %105 : vector<8x128xf32>
    %cst_25 = arith.constant 1.000000e+00 : f32
    %107 = vector.broadcast %cst_25 : f32 to vector<8x128xf32>
    %108 = arith.addf %107, %106 : vector<8x128xf32>
    %109 = arith.divf %107, %108 : vector<8x128xf32>
    %110 = vector.extract_strided_slice %92 {offsets = [0, 256], sizes = [8, 128], strides = [1, 1]} : vector<8x384xf32> to vector<8x128xf32>
    %111 = vector.extract_strided_slice %93 {offsets = [0, 256], sizes = [8, 128], strides = [1, 1]} : vector<8x384xf32> to vector<8x128xf32>
    %112 = vector.broadcast %1 : vector<1x128xf32> to vector<8x128xf32>
    %113 = arith.addf %111, %112 : vector<8x128xf32>
    %114 = arith.mulf %101, %113 : vector<8x128xf32>
    %115 = arith.addf %110, %114 : vector<8x128xf32>
    %116 = math.tanh %115 : vector<8x128xf32>
    %117 = arith.subf %89, %116 : vector<8x128xf32>
    %118 = arith.mulf %109, %117 : vector<8x128xf32>
    %119 = arith.addf %116, %118 : vector<8x128xf32>
    %120 = vector.broadcast %c2_i32 : i32 to vector<8x1xi32>
    %121 = arith.cmpi slt, %120, %2 : vector<8x1xi32>
    %cst_26 = arith.constant 0.000000e+00 : f32
    %122 = vector.shape_cast %121 : vector<8x1xi1> to vector<8x1xi1>
    %123 = vector.broadcast %122 : vector<8x1xi1> to vector<8x128xi1>
    %124 = vector.broadcast %cst_26 : f32 to vector<8x128xf32>
    %125 = arith.select %123, %119, %124 : vector<8x128xi1>, vector<8x128xf32>
    %126 = arith.index_cast %c2_i32 : i32 to index
    %c0_27 = arith.constant 0 : index
    %c0_28 = arith.constant 0 : index
    %127 = vector.load %arg5[%126, %c0_27, %c0_28] : memref<8x8x128xf32, #tpu.memory_space<vmem>>, vector<1x8x128xf32>
    %128 = vector.shape_cast %127 : vector<1x8x128xf32> to vector<8x128xf32>
    %129 = vector.shape_cast %125 : vector<8x128xf32> to vector<1x8x128xf32>
    tpu.vector_store %arg5[%126, %c0_27, %c0_28], %129 {strides = array<i32>} : memref<8x8x128xf32, #tpu.memory_space<vmem>>, vector<1x8x128xf32>,
    %130 = vector.shape_cast %121 : vector<8x1xi1> to vector<8x1xi1>
    %131 = vector.broadcast %130 : vector<8x1xi1> to vector<8x128xi1>
    %132 = arith.select %131, %119, %89 : vector<8x128xi1>, vector<8x128xf32>
    %c3_i32 = arith.constant 3 : i32
    %133 = arith.index_cast %c3_i32 : i32 to index
    %c0_29 = arith.constant 0 : index
    %c0_30 = arith.constant 0 : index
    %134 = vector.load %arg1[%133, %c0_29, %c0_30] : memref<8x8x384xf32, #tpu.memory_space<vmem>>, vector<1x8x384xf32>
    %135 = vector.shape_cast %134 : vector<1x8x384xf32> to vector<8x384xf32>
    %cst_31 = arith.constant dense<0.000000e+00> : vector<8x384xf32>
    %136 = tpu.matmul %132, %0, %cst_31 {dimension_numbers = #tpu.dot_dimension_numbers<[1], [0], [0], [1], [0, 0, 1, 1], [], []>} : vector<8x128xf32>, vector<128x384xf32>, vector<8x384xf32> -> vector<8x384xf32>
    %137 = vector.extract_strided_slice %135 {offsets = [0, 0], sizes = [8, 128], strides = [1, 1]} : vector<8x384xf32> to vector<8x128xf32>
    %138 = vector.extract_strided_slice %136 {offsets = [0, 0], sizes = [8, 128], strides = [1, 1]} : vector<8x384xf32> to vector<8x128xf32>
    %139 = arith.addf %137, %138 : vector<8x128xf32>
    %140 = arith.negf %139 : vector<8x128xf32>
    %141 = math.exp %140 : vector<8x128xf32>
    %cst_32 = arith.constant 1.000000e+00 : f32
    %142 = vector.broadcast %cst_32 : f32 to vector<8x128xf32>
    %143 = arith.addf %142, %141 : vector<8x128xf32>
    %144 = arith.divf %142, %143 : vector<8x128xf32>
    %145 = vector.extract_strided_slice %135 {offsets = [0, 128], sizes = [8, 128], strides = [1, 1]} : vector<8x384xf32> to vector<8x128xf32>
    %146 = vector.extract_strided_slice %136 {offsets = [0, 128], sizes = [8, 128], strides = [1, 1]} : vector<8x384xf32> to vector<8x128xf32>
    %147 = arith.addf %145, %146 : vector<8x128xf32>
    %148 = arith.negf %147 : vector<8x128xf32>
    %149 = math.exp %148 : vector<8x128xf32>
    %cst_33 = arith.constant 1.000000e+00 : f32
    %150 = vector.broadcast %cst_33 : f32 to vector<8x128xf32>
    %151 = arith.addf %150, %149 : vector<8x128xf32>
    %152 = arith.divf %150, %151 : vector<8x128xf32>
    %153 = vector.extract_strided_slice %135 {offsets = [0, 256], sizes = [8, 128], strides = [1, 1]} : vector<8x384xf32> to vector<8x128xf32>
    %154 = vector.extract_strided_slice %136 {offsets = [0, 256], sizes = [8, 128], strides = [1, 1]} : vector<8x384xf32> to vector<8x128xf32>
    %155 = vector.broadcast %1 : vector<1x128xf32> to vector<8x128xf32>
    %156 = arith.addf %154, %155 : vector<8x128xf32>
    %157 = arith.mulf %144, %156 : vector<8x128xf32>
    %158 = arith.addf %153, %157 : vector<8x128xf32>
    %159 = math.tanh %158 : vector<8x128xf32>
    %160 = arith.subf %132, %159 : vector<8x128xf32>
    %161 = arith.mulf %152, %160 : vector<8x128xf32>
    %162 = arith.addf %159, %161 : vector<8x128xf32>
    %163 = vector.broadcast %c3_i32 : i32 to vector<8x1xi32>
    %164 = arith.cmpi slt, %163, %2 : vector<8x1xi32>
    %cst_34 = arith.constant 0.000000e+00 : f32
    %165 = vector.shape_cast %164 : vector<8x1xi1> to vector<8x1xi1>
    %166 = vector.broadcast %165 : vector<8x1xi1> to vector<8x128xi1>
    %167 = vector.broadcast %cst_34 : f32 to vector<8x128xf32>
    %168 = arith.select %166, %162, %167 : vector<8x128xi1>, vector<8x128xf32>
    %169 = arith.index_cast %c3_i32 : i32 to index
    %c0_35 = arith.constant 0 : index
    %c0_36 = arith.constant 0 : index
    %170 = vector.load %arg5[%169, %c0_35, %c0_36] : memref<8x8x128xf32, #tpu.memory_space<vmem>>, vector<1x8x128xf32>
    %171 = vector.shape_cast %170 : vector<1x8x128xf32> to vector<8x128xf32>
    %172 = vector.shape_cast %168 : vector<8x128xf32> to vector<1x8x128xf32>
    tpu.vector_store %arg5[%169, %c0_35, %c0_36], %172 {strides = array<i32>} : memref<8x8x128xf32, #tpu.memory_space<vmem>>, vector<1x8x128xf32>,
    %173 = vector.shape_cast %164 : vector<8x1xi1> to vector<8x1xi1>
    %174 = vector.broadcast %173 : vector<8x1xi1> to vector<8x128xi1>
    %175 = arith.select %174, %162, %132 : vector<8x128xi1>, vector<8x128xf32>
    %c4_i32 = arith.constant 4 : i32
    %176 = arith.index_cast %c4_i32 : i32 to index
    %c0_37 = arith.constant 0 : index
    %c0_38 = arith.constant 0 : index
    %177 = vector.load %arg1[%176, %c0_37, %c0_38] : memref<8x8x384xf32, #tpu.memory_space<vmem>>, vector<1x8x384xf32>
    %178 = vector.shape_cast %177 : vector<1x8x384xf32> to vector<8x384xf32>
    %cst_39 = arith.constant dense<0.000000e+00> : vector<8x384xf32>
    %179 = tpu.matmul %175, %0, %cst_39 {dimension_numbers = #tpu.dot_dimension_numbers<[1], [0], [0], [1], [0, 0, 1, 1], [], []>} : vector<8x128xf32>, vector<128x384xf32>, vector<8x384xf32> -> vector<8x384xf32>
    %180 = vector.extract_strided_slice %178 {offsets = [0, 0], sizes = [8, 128], strides = [1, 1]} : vector<8x384xf32> to vector<8x128xf32>
    %181 = vector.extract_strided_slice %179 {offsets = [0, 0], sizes = [8, 128], strides = [1, 1]} : vector<8x384xf32> to vector<8x128xf32>
    %182 = arith.addf %180, %181 : vector<8x128xf32>
    %183 = arith.negf %182 : vector<8x128xf32>
    %184 = math.exp %183 : vector<8x128xf32>
    %cst_40 = arith.constant 1.000000e+00 : f32
    %185 = vector.broadcast %cst_40 : f32 to vector<8x128xf32>
    %186 = arith.addf %185, %184 : vector<8x128xf32>
    %187 = arith.divf %185, %186 : vector<8x128xf32>
    %188 = vector.extract_strided_slice %178 {offsets = [0, 128], sizes = [8, 128], strides = [1, 1]} : vector<8x384xf32> to vector<8x128xf32>
    %189 = vector.extract_strided_slice %179 {offsets = [0, 128], sizes = [8, 128], strides = [1, 1]} : vector<8x384xf32> to vector<8x128xf32>
    %190 = arith.addf %188, %189 : vector<8x128xf32>
    %191 = arith.negf %190 : vector<8x128xf32>
    %192 = math.exp %191 : vector<8x128xf32>
    %cst_41 = arith.constant 1.000000e+00 : f32
    %193 = vector.broadcast %cst_41 : f32 to vector<8x128xf32>
    %194 = arith.addf %193, %192 : vector<8x128xf32>
    %195 = arith.divf %193, %194 : vector<8x128xf32>
    %196 = vector.extract_strided_slice %178 {offsets = [0, 256], sizes = [8, 128], strides = [1, 1]} : vector<8x384xf32> to vector<8x128xf32>
    %197 = vector.extract_strided_slice %179 {offsets = [0, 256], sizes = [8, 128], strides = [1, 1]} : vector<8x384xf32> to vector<8x128xf32>
    %198 = vector.broadcast %1 : vector<1x128xf32> to vector<8x128xf32>
    %199 = arith.addf %197, %198 : vector<8x128xf32>
    %200 = arith.mulf %187, %199 : vector<8x128xf32>
    %201 = arith.addf %196, %200 : vector<8x128xf32>
    %202 = math.tanh %201 : vector<8x128xf32>
    %203 = arith.subf %175, %202 : vector<8x128xf32>
    %204 = arith.mulf %195, %203 : vector<8x128xf32>
    %205 = arith.addf %202, %204 : vector<8x128xf32>
    %206 = vector.broadcast %c4_i32 : i32 to vector<8x1xi32>
    %207 = arith.cmpi slt, %206, %2 : vector<8x1xi32>
    %cst_42 = arith.constant 0.000000e+00 : f32
    %208 = vector.shape_cast %207 : vector<8x1xi1> to vector<8x1xi1>
    %209 = vector.broadcast %208 : vector<8x1xi1> to vector<8x128xi1>
    %210 = vector.broadcast %cst_42 : f32 to vector<8x128xf32>
    %211 = arith.select %209, %205, %210 : vector<8x128xi1>, vector<8x128xf32>
    %212 = arith.index_cast %c4_i32 : i32 to index
    %c0_43 = arith.constant 0 : index
    %c0_44 = arith.constant 0 : index
    %213 = vector.load %arg5[%212, %c0_43, %c0_44] : memref<8x8x128xf32, #tpu.memory_space<vmem>>, vector<1x8x128xf32>
    %214 = vector.shape_cast %213 : vector<1x8x128xf32> to vector<8x128xf32>
    %215 = vector.shape_cast %211 : vector<8x128xf32> to vector<1x8x128xf32>
    tpu.vector_store %arg5[%212, %c0_43, %c0_44], %215 {strides = array<i32>} : memref<8x8x128xf32, #tpu.memory_space<vmem>>, vector<1x8x128xf32>,
    %216 = vector.shape_cast %207 : vector<8x1xi1> to vector<8x1xi1>
    %217 = vector.broadcast %216 : vector<8x1xi1> to vector<8x128xi1>
    %218 = arith.select %217, %205, %175 : vector<8x128xi1>, vector<8x128xf32>
    %c5_i32 = arith.constant 5 : i32
    %219 = arith.index_cast %c5_i32 : i32 to index
    %c0_45 = arith.constant 0 : index
    %c0_46 = arith.constant 0 : index
    %220 = vector.load %arg1[%219, %c0_45, %c0_46] : memref<8x8x384xf32, #tpu.memory_space<vmem>>, vector<1x8x384xf32>
    %221 = vector.shape_cast %220 : vector<1x8x384xf32> to vector<8x384xf32>
    %cst_47 = arith.constant dense<0.000000e+00> : vector<8x384xf32>
    %222 = tpu.matmul %218, %0, %cst_47 {dimension_numbers = #tpu.dot_dimension_numbers<[1], [0], [0], [1], [0, 0, 1, 1], [], []>} : vector<8x128xf32>, vector<128x384xf32>, vector<8x384xf32> -> vector<8x384xf32>
    %223 = vector.extract_strided_slice %221 {offsets = [0, 0], sizes = [8, 128], strides = [1, 1]} : vector<8x384xf32> to vector<8x128xf32>
    %224 = vector.extract_strided_slice %222 {offsets = [0, 0], sizes = [8, 128], strides = [1, 1]} : vector<8x384xf32> to vector<8x128xf32>
    %225 = arith.addf %223, %224 : vector<8x128xf32>
    %226 = arith.negf %225 : vector<8x128xf32>
    %227 = math.exp %226 : vector<8x128xf32>
    %cst_48 = arith.constant 1.000000e+00 : f32
    %228 = vector.broadcast %cst_48 : f32 to vector<8x128xf32>
    %229 = arith.addf %228, %227 : vector<8x128xf32>
    %230 = arith.divf %228, %229 : vector<8x128xf32>
    %231 = vector.extract_strided_slice %221 {offsets = [0, 128], sizes = [8, 128], strides = [1, 1]} : vector<8x384xf32> to vector<8x128xf32>
    %232 = vector.extract_strided_slice %222 {offsets = [0, 128], sizes = [8, 128], strides = [1, 1]} : vector<8x384xf32> to vector<8x128xf32>
    %233 = arith.addf %231, %232 : vector<8x128xf32>
    %234 = arith.negf %233 : vector<8x128xf32>
    %235 = math.exp %234 : vector<8x128xf32>
    %cst_49 = arith.constant 1.000000e+00 : f32
    %236 = vector.broadcast %cst_49 : f32 to vector<8x128xf32>
    %237 = arith.addf %236, %235 : vector<8x128xf32>
    %238 = arith.divf %236, %237 : vector<8x128xf32>
    %239 = vector.extract_strided_slice %221 {offsets = [0, 256], sizes = [8, 128], strides = [1, 1]} : vector<8x384xf32> to vector<8x128xf32>
    %240 = vector.extract_strided_slice %222 {offsets = [0, 256], sizes = [8, 128], strides = [1, 1]} : vector<8x384xf32> to vector<8x128xf32>
    %241 = vector.broadcast %1 : vector<1x128xf32> to vector<8x128xf32>
    %242 = arith.addf %240, %241 : vector<8x128xf32>
    %243 = arith.mulf %230, %242 : vector<8x128xf32>
    %244 = arith.addf %239, %243 : vector<8x128xf32>
    %245 = math.tanh %244 : vector<8x128xf32>
    %246 = arith.subf %218, %245 : vector<8x128xf32>
    %247 = arith.mulf %238, %246 : vector<8x128xf32>
    %248 = arith.addf %245, %247 : vector<8x128xf32>
    %249 = vector.broadcast %c5_i32 : i32 to vector<8x1xi32>
    %250 = arith.cmpi slt, %249, %2 : vector<8x1xi32>
    %cst_50 = arith.constant 0.000000e+00 : f32
    %251 = vector.shape_cast %250 : vector<8x1xi1> to vector<8x1xi1>
    %252 = vector.broadcast %251 : vector<8x1xi1> to vector<8x128xi1>
    %253 = vector.broadcast %cst_50 : f32 to vector<8x128xf32>
    %254 = arith.select %252, %248, %253 : vector<8x128xi1>, vector<8x128xf32>
    %255 = arith.index_cast %c5_i32 : i32 to index
    %c0_51 = arith.constant 0 : index
    %c0_52 = arith.constant 0 : index
    %256 = vector.load %arg5[%255, %c0_51, %c0_52] : memref<8x8x128xf32, #tpu.memory_space<vmem>>, vector<1x8x128xf32>
    %257 = vector.shape_cast %256 : vector<1x8x128xf32> to vector<8x128xf32>
    %258 = vector.shape_cast %254 : vector<8x128xf32> to vector<1x8x128xf32>
    tpu.vector_store %arg5[%255, %c0_51, %c0_52], %258 {strides = array<i32>} : memref<8x8x128xf32, #tpu.memory_space<vmem>>, vector<1x8x128xf32>,
    %259 = vector.shape_cast %250 : vector<8x1xi1> to vector<8x1xi1>
    %260 = vector.broadcast %259 : vector<8x1xi1> to vector<8x128xi1>
    %261 = arith.select %260, %248, %218 : vector<8x128xi1>, vector<8x128xf32>
    %c6_i32 = arith.constant 6 : i32
    %262 = arith.index_cast %c6_i32 : i32 to index
    %c0_53 = arith.constant 0 : index
    %c0_54 = arith.constant 0 : index
    %263 = vector.load %arg1[%262, %c0_53, %c0_54] : memref<8x8x384xf32, #tpu.memory_space<vmem>>, vector<1x8x384xf32>
    %264 = vector.shape_cast %263 : vector<1x8x384xf32> to vector<8x384xf32>
    %cst_55 = arith.constant dense<0.000000e+00> : vector<8x384xf32>
    %265 = tpu.matmul %261, %0, %cst_55 {dimension_numbers = #tpu.dot_dimension_numbers<[1], [0], [0], [1], [0, 0, 1, 1], [], []>} : vector<8x128xf32>, vector<128x384xf32>, vector<8x384xf32> -> vector<8x384xf32>
    %266 = vector.extract_strided_slice %264 {offsets = [0, 0], sizes = [8, 128], strides = [1, 1]} : vector<8x384xf32> to vector<8x128xf32>
    %267 = vector.extract_strided_slice %265 {offsets = [0, 0], sizes = [8, 128], strides = [1, 1]} : vector<8x384xf32> to vector<8x128xf32>
    %268 = arith.addf %266, %267 : vector<8x128xf32>
    %269 = arith.negf %268 : vector<8x128xf32>
    %270 = math.exp %269 : vector<8x128xf32>
    %cst_56 = arith.constant 1.000000e+00 : f32
    %271 = vector.broadcast %cst_56 : f32 to vector<8x128xf32>
    %272 = arith.addf %271, %270 : vector<8x128xf32>
    %273 = arith.divf %271, %272 : vector<8x128xf32>
    %274 = vector.extract_strided_slice %264 {offsets = [0, 128], sizes = [8, 128], strides = [1, 1]} : vector<8x384xf32> to vector<8x128xf32>
    %275 = vector.extract_strided_slice %265 {offsets = [0, 128], sizes = [8, 128], strides = [1, 1]} : vector<8x384xf32> to vector<8x128xf32>
    %276 = arith.addf %274, %275 : vector<8x128xf32>
    %277 = arith.negf %276 : vector<8x128xf32>
    %278 = math.exp %277 : vector<8x128xf32>
    %cst_57 = arith.constant 1.000000e+00 : f32
    %279 = vector.broadcast %cst_57 : f32 to vector<8x128xf32>
    %280 = arith.addf %279, %278 : vector<8x128xf32>
    %281 = arith.divf %279, %280 : vector<8x128xf32>
    %282 = vector.extract_strided_slice %264 {offsets = [0, 256], sizes = [8, 128], strides = [1, 1]} : vector<8x384xf32> to vector<8x128xf32>
    %283 = vector.extract_strided_slice %265 {offsets = [0, 256], sizes = [8, 128], strides = [1, 1]} : vector<8x384xf32> to vector<8x128xf32>
    %284 = vector.broadcast %1 : vector<1x128xf32> to vector<8x128xf32>
    %285 = arith.addf %283, %284 : vector<8x128xf32>
    %286 = arith.mulf %273, %285 : vector<8x128xf32>
    %287 = arith.addf %282, %286 : vector<8x128xf32>
    %288 = math.tanh %287 : vector<8x128xf32>
    %289 = arith.subf %261, %288 : vector<8x128xf32>
    %290 = arith.mulf %281, %289 : vector<8x128xf32>
    %291 = arith.addf %288, %290 : vector<8x128xf32>
    %292 = vector.broadcast %c6_i32 : i32 to vector<8x1xi32>
    %293 = arith.cmpi slt, %292, %2 : vector<8x1xi32>
    %cst_58 = arith.constant 0.000000e+00 : f32
    %294 = vector.shape_cast %293 : vector<8x1xi1> to vector<8x1xi1>
    %295 = vector.broadcast %294 : vector<8x1xi1> to vector<8x128xi1>
    %296 = vector.broadcast %cst_58 : f32 to vector<8x128xf32>
    %297 = arith.select %295, %291, %296 : vector<8x128xi1>, vector<8x128xf32>
    %298 = arith.index_cast %c6_i32 : i32 to index
    %c0_59 = arith.constant 0 : index
    %c0_60 = arith.constant 0 : index
    %299 = vector.load %arg5[%298, %c0_59, %c0_60] : memref<8x8x128xf32, #tpu.memory_space<vmem>>, vector<1x8x128xf32>
    %300 = vector.shape_cast %299 : vector<1x8x128xf32> to vector<8x128xf32>
    %301 = vector.shape_cast %297 : vector<8x128xf32> to vector<1x8x128xf32>
    tpu.vector_store %arg5[%298, %c0_59, %c0_60], %301 {strides = array<i32>} : memref<8x8x128xf32, #tpu.memory_space<vmem>>, vector<1x8x128xf32>,
    %302 = vector.shape_cast %293 : vector<8x1xi1> to vector<8x1xi1>
    %303 = vector.broadcast %302 : vector<8x1xi1> to vector<8x128xi1>
    %304 = arith.select %303, %291, %261 : vector<8x128xi1>, vector<8x128xf32>
    %c7_i32 = arith.constant 7 : i32
    %305 = arith.index_cast %c7_i32 : i32 to index
    %c0_61 = arith.constant 0 : index
    %c0_62 = arith.constant 0 : index
    %306 = vector.load %arg1[%305, %c0_61, %c0_62] : memref<8x8x384xf32, #tpu.memory_space<vmem>>, vector<1x8x384xf32>
    %307 = vector.shape_cast %306 : vector<1x8x384xf32> to vector<8x384xf32>
    %cst_63 = arith.constant dense<0.000000e+00> : vector<8x384xf32>
    %308 = tpu.matmul %304, %0, %cst_63 {dimension_numbers = #tpu.dot_dimension_numbers<[1], [0], [0], [1], [0, 0, 1, 1], [], []>} : vector<8x128xf32>, vector<128x384xf32>, vector<8x384xf32> -> vector<8x384xf32>
    %309 = vector.extract_strided_slice %307 {offsets = [0, 0], sizes = [8, 128], strides = [1, 1]} : vector<8x384xf32> to vector<8x128xf32>
    %310 = vector.extract_strided_slice %308 {offsets = [0, 0], sizes = [8, 128], strides = [1, 1]} : vector<8x384xf32> to vector<8x128xf32>
    %311 = arith.addf %309, %310 : vector<8x128xf32>
    %312 = arith.negf %311 : vector<8x128xf32>
    %313 = math.exp %312 : vector<8x128xf32>
    %cst_64 = arith.constant 1.000000e+00 : f32
    %314 = vector.broadcast %cst_64 : f32 to vector<8x128xf32>
    %315 = arith.addf %314, %313 : vector<8x128xf32>
    %316 = arith.divf %314, %315 : vector<8x128xf32>
    %317 = vector.extract_strided_slice %307 {offsets = [0, 128], sizes = [8, 128], strides = [1, 1]} : vector<8x384xf32> to vector<8x128xf32>
    %318 = vector.extract_strided_slice %308 {offsets = [0, 128], sizes = [8, 128], strides = [1, 1]} : vector<8x384xf32> to vector<8x128xf32>
    %319 = arith.addf %317, %318 : vector<8x128xf32>
    %320 = arith.negf %319 : vector<8x128xf32>
    %321 = math.exp %320 : vector<8x128xf32>
    %cst_65 = arith.constant 1.000000e+00 : f32
    %322 = vector.broadcast %cst_65 : f32 to vector<8x128xf32>
    %323 = arith.addf %322, %321 : vector<8x128xf32>
    %324 = arith.divf %322, %323 : vector<8x128xf32>
    %325 = vector.extract_strided_slice %307 {offsets = [0, 256], sizes = [8, 128], strides = [1, 1]} : vector<8x384xf32> to vector<8x128xf32>
    %326 = vector.extract_strided_slice %308 {offsets = [0, 256], sizes = [8, 128], strides = [1, 1]} : vector<8x384xf32> to vector<8x128xf32>
    %327 = vector.broadcast %1 : vector<1x128xf32> to vector<8x128xf32>
    %328 = arith.addf %326, %327 : vector<8x128xf32>
    %329 = arith.mulf %316, %328 : vector<8x128xf32>
    %330 = arith.addf %325, %329 : vector<8x128xf32>
    %331 = math.tanh %330 : vector<8x128xf32>
    %332 = arith.subf %304, %331 : vector<8x128xf32>
    %333 = arith.mulf %324, %332 : vector<8x128xf32>
    %334 = arith.addf %331, %333 : vector<8x128xf32>
    %335 = vector.broadcast %c7_i32 : i32 to vector<8x1xi32>
    %336 = arith.cmpi slt, %335, %2 : vector<8x1xi32>
    %cst_66 = arith.constant 0.000000e+00 : f32
    %337 = vector.shape_cast %336 : vector<8x1xi1> to vector<8x1xi1>
    %338 = vector.broadcast %337 : vector<8x1xi1> to vector<8x128xi1>
    %339 = vector.broadcast %cst_66 : f32 to vector<8x128xf32>
    %340 = arith.select %338, %334, %339 : vector<8x128xi1>, vector<8x128xf32>
    %341 = arith.index_cast %c7_i32 : i32 to index
    %c0_67 = arith.constant 0 : index
    %c0_68 = arith.constant 0 : index
    %342 = vector.load %arg5[%341, %c0_67, %c0_68] : memref<8x8x128xf32, #tpu.memory_space<vmem>>, vector<1x8x128xf32>
    %343 = vector.shape_cast %342 : vector<1x8x128xf32> to vector<8x128xf32>
    %344 = vector.shape_cast %340 : vector<8x128xf32> to vector<1x8x128xf32>
    tpu.vector_store %arg5[%341, %c0_67, %c0_68], %344 {strides = array<i32>} : memref<8x8x128xf32, #tpu.memory_space<vmem>>, vector<1x8x128xf32>,
    %345 = vector.shape_cast %336 : vector<8x1xi1> to vector<8x1xi1>
    %346 = vector.broadcast %345 : vector<8x1xi1> to vector<8x128xi1>
    %347 = arith.select %346, %334, %304 : vector<8x128xi1>, vector<8x128xf32>
    %c8_i32 = arith.constant 8 : i32
    return
  }
  func.func @transform_0(%arg0: i32) -> (i32, i32, i32) {
    %c0_i32 = arith.constant 0 : i32
    %c0_i32_0 = arith.constant 0 : i32
    %c0_i32_1 = arith.constant 0 : i32
    return %c0_i32, %arg0, %c0_i32_0 : i32, i32, i32
  }
  func.func @transform_1(%arg0: i32) -> (i32, i32) {
    %c0_i32 = arith.constant 0 : i32
    %c0_i32_0 = arith.constant 0 : i32
    %c0_i32_1 = arith.constant 0 : i32
    return %c0_i32, %c0_i32_0 : i32, i32
  }
  func.func @transform_2(%arg0: i32) -> (i32, i32) {
    %c0_i32 = arith.constant 0 : i32
    %c0_i32_0 = arith.constant 0 : i32
    %c0_i32_1 = arith.constant 0 : i32
    return %c0_i32, %c0_i32_0 : i32, i32
  }
  func.func @transform_3(%arg0: i32) -> (i32, i32) {
    %c0_i32 = arith.constant 0 : i32
    %c0_i32_0 = arith.constant 0 : i32
    return %arg0, %c0_i32 : i32, i32
  }
  func.func @transform_4(%arg0: i32) -> (i32, i32, i32) {
    %c0_i32 = arith.constant 0 : i32
    %c0_i32_0 = arith.constant 0 : i32
    %c0_i32_1 = arith.constant 0 : i32
    return %c0_i32, %arg0, %c0_i32_0 : i32, i32, i32
  }
}

</mosaic_0001>

<bundles_post_ra>
// kernel: tpu_custom_call.1
= control target key start
LH: loop header
LB: loop body
LE: loop exit
PB: predicated region body
PF: predicated region fallthrough
CT: control target
= control target key end

     0   :  { %9 = vsyncpa [#allocation3], 0  ;;  %s3045_s0 = inlined_call_operand.hbm [shape: f32[8,8,384], index: 0, kind: input, shape index: {}]   ;;  %s3046_s1 = inlined_call_operand.hbm [shape: f32[128,384], index: 1, kind: input, shape index: {}]   ;;  %s3047_s2 = inlined_call_operand.vmem [shape: f32[1,128], index: 2, kind: input, shape index: {}]   ;;  %s3048_s3 = inlined_call_operand.vmem [shape: s32[8,1], index: 3, kind: input, shape index: {}]   ;;  %s3049_s4 = inlined_call_operand.hbm [shape: f32[8,8,128], index: 4, kind: output, shape index: {}]  }
   0x1   :  { %10 = vsyncpa [#allocation6], 0 }
   0x2   :  { %11 = vsyncpa [#allocation4], 0  ;;  %s2572_s15 = smov [#allocation2]   ;;  %s2500_s19 = scalar_lea.hbm %s3045_s0, 3072 }
   0x3   :  { %s17_s16 = sshll.u32 %s2572_s15, 4  ;;  %p2501_p0 = scmp.ne.s32.totalorder %s3045_s0, %s2500_s19  ;;  %s18_s16 = int_to_ptr.vmem [resolvable:$true] %s17_s16 }
   0x4   :  { %p2504_p1 = scmp.lt.u32.totalorder %s2500_s19, %s3045_s0 }
   0x6   :  { %p2506_p2 = pnand %p2504_p1, %p2501_p0 }
   0x8   :  { %2509 = shalt.err (!%p2506_p2)
}
   0x9   :  { %s2510_s24 = scalar_lea.vmem %s18_s16, 3072  ;;  %p2515_p4 = scmp.lt.s32.totalorder %s18_s16, %s18_s16 }
   0xa   :  { %p2511_p3 = scmp.ne.s32.totalorder %s18_s16, %s2510_s24  ;;  %p2516_p5 = scmp.lt.s32.totalorder %s2510_s24, %s2510_s24 }
   0xc   :  { %p2517_p6 = por %p2516_p5, %p2515_p4 }
   0xe   :  { %p2518_p7 = pnand %p2517_p6, %p2511_p3 }
  0x10   :  { %2521 = shalt.err (!%p2518_p7)
}
  0x11   :  { %s2573_s25 = smov 384   ;;  %s2574_s26 = smov 24  }
  0x12   :  { %23 = dma.hbm_to_vmem [thread:$0]  %s3045_s0, 3072, %s18_s16, [#allocation3], %s2573_s25, %s2573_s25, %s2574_s26  }
  0x13   :  { %s2575_s29 = smov [#allocation5]   ;;  %s2522_s7 = scalar_lea.hbm %s3046_s1, 6144 }
  0x14   :  { %s29_s30 = sshll.u32 %s2575_s29, 4  ;;  %p2523_p8 = scmp.ne.s32.totalorder %s3046_s1, %s2522_s7  ;;  %s30_s30 = int_to_ptr.vmem [resolvable:$true] %s29_s30 }
  0x15   :  { %p2526_p9 = scmp.lt.u32.totalorder %s2522_s7, %s3046_s1 }
  0x17   :  { %p2528_p10 = pnand %p2526_p9, %p2523_p8 }
  0x19   :  { %2531 = shalt.err (!%p2528_p10)
}
  0x1a   :  { %s2532_s12 = scalar_lea.vmem %s30_s30, 6144  ;;  %p2537_p12 = scmp.lt.s32.totalorder %s30_s30, %s30_s30 }
  0x1b   :  { %p2533_p11 = scmp.ne.s32.totalorder %s30_s30, %s2532_s12  ;;  %p2538_p13 = scmp.lt.s32.totalorder %s2532_s12, %s2532_s12 }
  0x1d   :  { %p2539_p0 = por %p2538_p13, %p2537_p12 }
  0x1f   :  { %p2540_p1 = pnand %p2539_p0, %p2533_p11 }
  0x21   :  { %2543 = shalt.err (!%p2540_p1)
}
  0x22   :  { %35 = dma.hbm_to_vmem [thread:$0]  %s3046_s1, 6144, %s30_s30, [#allocation6], %s2573_s25, %s2573_s25, %s2574_s26  }
  0x23   :  { %2566 = dma.done.wait [#allocation3], 3072  }
  0x24   :  { %2567 = vsyncadd [#allocation3], 4294964224 }
  0x25   :  { %2568 = dma.done.wait [#allocation6], 6144  }
  0x26   :  { %2569 = vsyncadd [#allocation6], 4294961152  ;;  %v2576_v0 = vmov 0.0|0.0   ;;  %v2577_v1 = vmov 0.0   ;;  %vm2578_vm0 = vmmov 0   ;;  %v2579_v2 = vmov 0  }
  0x27   :  { %1991 = vmatprep.subr.bf16.mxu1 %v2576_v0  ;;  %163 = vmatprep.mubr.f32.mxu0 %v2577_v1  ;;  %v47_v3 = vld [vmem:[#allocation5 + $0x8] sm:$0xff]  ;;  %v50_v4 = vld [vmem:[#allocation5 + $0x20] sm:$0xff]  ;;  %v49_v7 = vld [vmem:[#allocation5 + $0x18] sm:$0xff] }
  0x28   :  { %1711 = vmatprep.mubr.msk.f32.mxu1 %vm2578_vm0, %v2577_v1  ;;  %2418 = vset.pattern.permute.xlu0 %v2579_v2  ;;  %v46_v5 = vld [vmem:[#allocation5] sm:$0xff]  ;;  %v2638_v6 = vpack.c.bf16 %v50_v4, %v47_v3  ;;  %v53_v8 = vld [vmem:[#allocation5 + $0x38] sm:$0xff]  ;;  %v56_v9 = vld [vmem:[#allocation5 + $0x50] sm:$0xff] }
  0x29   :  { %2419 = vset.pattern.permute.xlu1 %v2579_v2  ;;  %v2640_v10 = vpack.c.bf16 %v49_v7, %v46_v5  ;;  %v2642_v11 = vpack.c.bf16 %v56_v9, %v53_v8  ;;  %v52_v12 = vld [vmem:[#allocation5 + $0x30] sm:$0xff]  ;;  %v55_v13 = vld [vmem:[#allocation5 + $0x48] sm:$0xff]  ;;  %v62_v15 = vld [vmem:[#allocation5 + $0x80] sm:$0xff] }
  0x2a   :  { %v59_v14 = vld [vmem:[#allocation5 + $0x68] sm:$0xff]  ;;  %1960 = vmatprep.subr.bf16.mxu0 %v2638_v6  ;;  %v2646_v16 = vpack.c.bf16 %v55_v13, %v52_v12  ;;  %v58_v18 = vld [vmem:[#allocation5 + $0x60] sm:$0xff]  ;;  %v61_v19 = vld [vmem:[#allocation5 + $0x78] sm:$0xff] }
  0x2b   :  { %1962 = vmatpush1.bf16.msra.mxu0 %v2640_v10  ;;  %v2649_v17 = vpack.c.bf16 %v62_v15, %v59_v14  ;;  %v65_v20 = vld [vmem:[#allocation5 + $0x98] sm:$0xff]  ;;  %v68_v21 = vld [vmem:[#allocation5 + $0xb0] sm:$0xff]  ;;  %v2652_v22 = vpack.c.bf16 %v61_v19, %v58_v18  ;;  %v67_v25 = vld [vmem:[#allocation5 + $0xa8] sm:$0xff] }
  0x2c   :  { %1964 = vmatprep.subr.bf16.mxu0 %v2642_v11  ;;  %v64_v23 = vld [vmem:[#allocation5 + $0x90] sm:$0xff]  ;;  %v2655_v24 = vpack.c.bf16 %v68_v21, %v65_v20  ;;  %v51_v27 = vld [vmem:[#allocation5 + $0x28] sm:$0xff]  ;;  %v74_v29 = vld [vmem:[#allocation5 + $0xe0] sm:$0xff] }
  0x2d   :  { %v48_v26 = vld [vmem:[#allocation5 + $0x10] sm:$0xff]  ;;  %v71_v28 = vld [vmem:[#allocation5 + $0xc8] sm:$0xff]  ;;  %v54_v31 = vld [vmem:[#allocation5 + $0x40] sm:$0xff]  ;;  %v2660_v33 = vpack.c.bf16 %v67_v25, %v64_v23 }
  0x2e   :  { %v2657_v30 = vpack.c.bf16 %v51_v27, %v48_v26  ;;  %v57_v32 = vld [vmem:[#allocation5 + $0x58] sm:$0xff]  ;;  %v70_v34 = vld [vmem:[#allocation5 + $0xc0] sm:$0xff]  ;;  %v2666_v36 = vpack.c.bf16 %v74_v29, %v71_v28  ;;  %v60_v38 = vld [vmem:[#allocation5 + $0x70] sm:$0xff] }
  0x2f   :  { %1966 = vmatpush1.bf16.msra.mxu0 %v2646_v16  ;;  %v2663_v35 = vpack.c.bf16 %v57_v32, %v54_v31  ;;  %v73_v37 = vld [vmem:[#allocation5 + $0xd8] sm:$0xff]  ;;  %v63_v39 = vld [vmem:[#allocation5 + $0x88] sm:$0xff]  ;;  %v80_v41 = vld [vmem:[#allocation5 + $0x110] sm:$0xff] }
  0x30   :  { %1968 = vmatprep.subr.bf16.mxu0 %v2649_v17  ;;  %1993 = vmatpush3.bf16.msra.mxu1 %v2657_v30  ;;  %v77_v40 = vld [vmem:[#allocation5 + $0xf8] sm:$0xff]  ;;  %v2670_v42 = vpack.c.bf16 %v73_v37, %v70_v34  ;;  %v76_v43 = vld [vmem:[#allocation5 + $0xf0] sm:$0xff]  ;;  %v2673_v44 = vpack.c.bf16 %v63_v39, %v60_v38  ;;  %v2678_v45 = vld [vmem:[%s3048_s3] sm:$0xff] }
  0x31   :  { %1994 = vmatprep.subr.bf16.mxu1 %v2576_v0  ;;  %v2681_v46 = vpack.c.bf16 %v80_v41, %v77_v40  ;;  %v79_v47 = vld [vmem:[#allocation5 + $0x108] sm:$0xff]  ;;  %v66_v48 = vld [vmem:[#allocation5 + $0xa0] sm:$0xff]  ;;  %v69_v49 = vld [vmem:[#allocation5 + $0xb8] sm:$0xff]  ;;  %vm267_vm1 = vcmp.gt.s32.totalorder %v2678_v45, 0  ;;  %vm441_vm2 = vcmp.gt.s32.totalorder %v2678_v45, 1  ;;  %vm969_vm3 = vcmp.gt.s32.totalorder %v2678_v45, 4 }
  0x32   :  { %v83_v50 = vld [vmem:[#allocation5 + $0x128] sm:$0xff]  ;;  %v86_v51 = vld [vmem:[#allocation5 + $0x140] sm:$0xff]  ;;  %v268_v52 = vsel %vm267_vm1, 1, %v2579_v2  ;;  %v2688_v53 = vpack.c.bf16 %v79_v47, %v76_v43  ;;  %v2691_v55 = vpack.c.bf16 %v69_v49, %v66_v48  ;;  %v442_v56 = vsel %vm441_vm2, 1, %v2579_v2  ;;  %v85_v58 = vld [vmem:[#allocation5 + $0x138] sm:$0xff] }
  0x33   :  { %1970 = vmatpush1.bf16.msra.mxu0 %v2652_v22  ;;  %270 = vperm.xlu0 %2418, %v268_v52   ;;  %v82_v54 = vld [vmem:[#allocation5 + $0x120] sm:$0xff]  ;;  %v2695_v57 = vpack.c.bf16 %v86_v51, %v83_v50  ;;  %v72_v59 = vld [vmem:[#allocation5 + $0xd0] sm:$0xff]  ;;  %v75_v60 = vld [vmem:[#allocation5 + $0xe8] sm:$0xff]  ;;  %v970_v5 = vsel %vm969_vm3, 1, %v2579_v2  ;;  %vm1321_vm4 = vcmp.gt.s32.totalorder %v2678_v45, 6  ;;  %vm617_vm6 = vcmp.gt.s32.totalorder %v2678_v45, 2 }
  0x34   :  { %1972 = vmatprep.subr.bf16.mxu0 %v2655_v24  ;;  %1996 = vmatpush3.bf16.msra.mxu1 %v2663_v35  ;;  %v89_v61 = vld [vmem:[#allocation5 + $0x158] sm:$0xff]  ;;  %v92_v62 = vld [vmem:[#allocation5 + $0x170] sm:$0xff]  ;;  %v2700_v63 = vpack.c.bf16 %v85_v58, %v82_v54  ;;  %v2703_v4 = vpack.c.bf16 %v75_v60, %v72_v59  ;;  %v91_v8 = vld [vmem:[#allocation5 + $0x168] sm:$0xff]  ;;  %v1322_v15 = vsel %vm1321_vm4, 1, %v2579_v2  ;;  %vm793_vm7 = vcmp.gt.s32.totalorder %v2678_v45, 3 }
  0x35   :  { %1997 = vmatprep.subr.bf16.mxu1 %v2576_v0  ;;  %v88_v3 = vld [vmem:[#allocation5 + $0x150] sm:$0xff]  ;;  %v2707_v7 = vpack.c.bf16 %v92_v62, %v89_v61  ;;  %v78_v9 = vld [vmem:[#allocation5 + $0x100] sm:$0xff]  ;;  %v81_v12 = vld [vmem:[#allocation5 + $0x118] sm:$0xff]  ;;  %vm1145_vm8 = vcmp.gt.s32.totalorder %v2678_v45, 5  ;;  %vm1497_vm9 = vcmp.gt.s32.totalorder %v2678_v45, 7 }
  0x36   :  { %v2712_v13 = vpack.c.bf16 %v91_v8, %v88_v3  ;;  %v2715_v14 = vpack.c.bf16 %v81_v12, %v78_v9  ;;  %v84_v18 = vld [vmem:[#allocation5 + $0x130] sm:$0xff]  ;;  %v87_v19 = vld [vmem:[#allocation5 + $0x148] sm:$0xff]  ;;  %v90_v21 = vld [vmem:[#allocation5 + $0x160] sm:$0xff]  ;;  %v794_v8 = vsel %vm793_vm7, 1, %v2579_v2  ;;  %v1146_v9 = vsel %vm1145_vm8, 1, %v2579_v2 }
  0x37   :  { %1974 = vmatpush1.bf16.msra.mxu0 %v2660_v33  ;;  %444 = vperm.xlu0 %2418, %v442_v56   ;;  %v2722_v20 = vpack.c.bf16 %v87_v19, %v84_v18  ;;  %v93_v23 = vld [vmem:[#allocation5 + $0x178] sm:$0xff]  ;;  %v96_v26 = vld [vmem:[#allocation2] sm:$0xff]  ;;  %v97_v32 = vld [vmem:[#allocation2 + $0x8] sm:$0xff]  ;;  %v1498_v12 = vsel %vm1497_vm9, 1, %v2579_v2 }
  0x38   :  { %1976 = vmatprep.subr.bf16.mxu0 %v2666_v36  ;;  %1999 = vmatpush3.bf16.msra.mxu1 %v2673_v44  ;;  %v2728_v25 = vpack.c.bf16 %v93_v23, %v90_v21  ;;  %v2772_v43 = vld [vmem:[%s3047_s2] ss:$0 sm:$0xff]  ;;  %v98_v50 = vld [vmem:[#allocation2 + $0x10] sm:$0xff]  ;;  %s2580_s2 = smov [#allocation7]  }
  0x39   :  { %2000 = vmatprep.subr.bf16.mxu1 %v2576_v0  ;;  %s1511_s16 = sshll.u32 %s2580_s2, 4  ;;  %s1512_s16 = int_to_ptr.vmem [resolvable:$true] %s1511_s16 }
  0x3a   :  { %s2544_s17 = scalar_lea.vmem %s1512_s16, 1024  ;;  %p2549_p3 = scmp.lt.s32.totalorder %s1512_s16, %s1512_s16 }
  0x3b   :  { %1978 = vmatpush1.bf16.msra.mxu0 %v2670_v42  ;;  %972 = vperm.xlu0 %2418, %v970_v5   ;;  %v618_v5 = vsel %vm617_vm6, 1, %v2579_v2  ;;  %p2545_p2 = scmp.ne.s32.totalorder %s1512_s16, %s2544_s17  ;;  %p2550_p4 = scmp.lt.s32.totalorder %s2544_s17, %s2544_s17 }
  0x3c   :  { %1980 = vmatprep.subr.bf16.mxu0 %v2681_v46  ;;  %2002 = vmatpush3.bf16.msra.mxu1 %v2691_v55 }
  0x3d   :  { %2003 = vmatprep.subr.bf16.mxu1 %v2576_v0  ;;  %620 = vperm.xlu1 %2419, %v618_v5   ;;  %p2551_p5 = por %p2550_p4, %p2549_p3 }
  0x3f   :  { %1982 = vmatpush1.bf16.msra.mxu0 %v2688_v53  ;;  %1324 = vperm.xlu0 %2418, %v1322_v15   ;;  %v276_v15 = vld [vmem:[#allocation2 + $0x18] sm:$0xff]  ;;  %p2552_p6 = pnand %p2551_p5, %p2545_p2 }
  0x40   :  { %1984 = vmatprep.subr.bf16.mxu0 %v2695_v57  ;;  %2005 = vmatpush3.bf16.msra.mxu1 %v2703_v4 }
  0x41   :  { %2006 = vmatprep.subr.bf16.mxu1 %v2576_v0  ;;  %796 = vperm.xlu1 %2419, %v794_v8   ;;  %v453_v8 = vld [vmem:[#allocation2 + $0x38] sm:$0xff] }
  0x43   :  { %1986 = vmatpush1.bf16.msra.mxu0 %v2700_v63 }
  0x44   :  { %1988 = vmatprep.subr.bf16.mxu0 %v2707_v7  ;;  %2008 = vmatpush3.bf16.msra.mxu1 %v2715_v14 }
  0x45   :  { %2009 = vmatprep.subr.bf16.mxu1 %v2576_v0  ;;  %1148 = vperm.xlu1 %2419, %v1146_v9  }
  0x47   :  { %1990 = vmatpush1.bf16.msra.mxu0 %v2712_v13 }
  0x48   :  { %2016 = vmatprep.subr.bf16.mxu0 %v2638_v6  ;;  %2011 = vmatpush3.bf16.msra.mxu1 %v2722_v20 }
  0x49   :  { %2012 = vmatprep.subr.bf16.mxu1 %v2576_v0  ;;  %1500 = vperm.xlu1 %2419, %v1498_v12  }
  0x4a   :  { %164 = vmatmul.mubr.f32.vlgmr.msra.gmra.mrb[0].mxu0 %v2577_v1 }
  0x4b   :  { %2018 = vmatpush1.bf16.msra.mxu0 %v2640_v10  ;;  %343 = vmatprep.mubr.f32.mxu0 %v2577_v1 }
  0x4c   :  { %2020 = vmatprep.subr.bf16.mxu0 %v2642_v11  ;;  %2014 = vmatpush3.bf16.msra.mxu1 %v2728_v25 }
  0x4d   :  { %2047 = vmatprep.subr.bf16.mxu1 %v2576_v0 }
  0x4f   :  { %2022 = vmatpush1.bf16.msra.mxu0 %v2646_v16  ;;  %1712 = vmatmul.mubr.f32.vlgmr.msra.gmra.mrb[0].mxu1 %v2577_v1 }
  0x50   :  { %2024 = vmatprep.subr.bf16.mxu0 %v2649_v17  ;;  %2049 = vmatpush3.bf16.msra.mxu1 %v2657_v30 }
  0x51   :  { %2050 = vmatprep.subr.bf16.mxu1 %v2576_v0  ;;  %1746 = vmatprep.mubr.msk.f32.mxu1 %vm2578_vm0, %v2577_v1 }
  0x53   :  { %2026 = vmatpush1.bf16.msra.mxu0 %v2652_v22 }
  0x54   :  { %2028 = vmatprep.subr.bf16.mxu0 %v2655_v24  ;;  %2052 = vmatpush3.bf16.msra.mxu1 %v2663_v35 }
  0x55   :  { %2053 = vmatprep.subr.bf16.mxu1 %v2576_v0 }
  0x57   :  { %2030 = vmatpush1.bf16.msra.mxu0 %v2660_v33 }
  0x58   :  { %2032 = vmatprep.subr.bf16.mxu0 %v2666_v36  ;;  %2055 = vmatpush3.bf16.msra.mxu1 %v2673_v44 }
  0x59   :  { %2056 = vmatprep.subr.bf16.mxu1 %v2576_v0 }
  0x5b   :  { %2034 = vmatpush1.bf16.msra.mxu0 %v2670_v42 }
  0x5c   :  { %2036 = vmatprep.subr.bf16.mxu0 %v2681_v46  ;;  %2058 = vmatpush3.bf16.msra.mxu1 %v2691_v55 }
  0x5d   :  { %2059 = vmatprep.subr.bf16.mxu1 %v2576_v0 }
  0x5f   :  { %2038 = vmatpush1.bf16.msra.mxu0 %v2688_v53 }
  0x60   :  { %2040 = vmatprep.subr.bf16.mxu0 %v2695_v57  ;;  %2061 = vmatpush3.bf16.msra.mxu1 %v2703_v4 }
  0x61   :  { %2062 = vmatprep.subr.bf16.mxu1 %v2576_v0 }
  0x63   :  { %2042 = vmatpush1.bf16.msra.mxu0 %v2700_v63 }
  0x64   :  { %2044 = vmatprep.subr.bf16.mxu0 %v2707_v7  ;;  %2064 = vmatpush3.bf16.msra.mxu1 %v2715_v14 }
  0x65   :  { %2065 = vmatprep.subr.bf16.mxu1 %v2576_v0 }
  0x67   :  { %2046 = vmatpush1.bf16.msra.mxu0 %v2712_v13 }
  0x68   :  { %2072 = vmatprep.subr.bf16.mxu0 %v2638_v6  ;;  %2067 = vmatpush3.bf16.msra.mxu1 %v2722_v20 }
  0x69   :  { %2068 = vmatprep.subr.bf16.mxu1 %v2576_v0 }
  0x6c   :  { %2070 = vmatpush3.bf16.msra.mxu1 %v2728_v25 }
  0x6d   :  { %2103 = vmatprep.subr.bf16.mxu1 %v2576_v0 }
  0xb2   :  { %v271_v60 = vpop.permute.xlu0 %270 }
  0xb3   :  { %vm272_vm5 = vcmp.eq.s32.totalorder %v271_v60, 1 }
 0x11d   :  { %v165_v27 = vpop.f32.mrb[0].mxu0 }
 0x11e   :  { %v240_v28 = vadd.f32 %v165_v27, %v96_v26  ;;  %v167_v29 = vpop.f32.mrb[1].mxu0 }
 0x11f   :  { %v247_v37 = vadd.f32 %v167_v29, %v97_v32 }
 0x120   :  { %v1524_v31 = vmul.f32 -1.442695, %v240_v28  ;;  %v277_v28 = vld [vmem:[#allocation2 + $0x20] sm:$0xff] }
 0x121   :  { %v1525_v39 = vmul.f32 -1.442695, %v247_v37 }
 0x122   :  { %2420 = vpow2.f32 %v1524_v31  ;;  %v236_v34 = vpop.f32.mrb[0].mxu1 }
 0x123   :  { %v1713_v38 = vpop.f32.mrb[1].mxu1  ;;  %2422 = vpow2.f32 %v1525_v39  ;;  %v260_v47 = vadd.f32 %v2772_v43, %v236_v34 }
 0x124   :  { %v278_v38 = vld [vmem:[#allocation2 + $0x28] sm:$0xff] }
 0x12c   :  { %v2421_v40 = vpop.eup %2420 }
 0x12d   :  { %v244_v41 = vadd.f32 1.0, %v2421_v40  ;;  %v2423_v48 = vpop.eup %2422 }
 0x12e   :  { %v251_v52 = vadd.f32 1.0, %v2423_v48 }
 0x12f   :  { %2424 = vrcp.f32 %v244_v41 }
 0x139   :  { %v2425_v49 = vpop.eup %2424 }
 0x13a   :  { %v261_v51 = vmul.f32 %v2425_v49, %v260_v47 }
 0x13c   :  { %v262_v54 = vadd.f32 %v261_v51, %v98_v50  ;;  %v445_v51 = vpop.permute.xlu0 %444 }
 0x13d   :  { %vm446_vm10 = vcmp.eq.s32.totalorder %v445_v51, 1 }
 0x13e   :  { %2426 = vtanh.f32 %v262_v54 }
 0x13f   :  { %2428 = vrcp.f32 %v251_v52 }
 0x148   :  { %v2427_v56 = vpop.eup %2426 }
 0x149   :  { %v264_v58 = vsub.f32 0.0, %v2427_v56  ;;  %v2429_v59 = vpop.eup %2428 }
 0x14b   :  { %v265_v61 = vmul.f32 %v2429_v59, %v264_v58  ;;  %v452_v58 = vld [vmem:[#allocation2 + $0x30] sm:$0xff] }
 0x14d   :  { %v266_v62 = vadd.f32 %v2427_v56, %v265_v61 }
 0x14f   :  { %v2775_v3 = vsel %vm272_vm5, %v266_v62, 0.0  ;;  %1527 = vmatmul.mubr.msk.f32.vlgmr.msra.gmra.mrb[2].mxu0 %vm272_vm5, %v266_v62  ;;  %1747 = vmatmul.mubr.msk.f32.vlgmr.msra.gmra.mrb[2].mxu1 %vm272_vm5, %v266_v62 }
 0x150   :  { %274 = vst [vmem:[#allocation7] sm:$0xff] %v2775_v3  ;;  %2074 = vmatpush1.bf16.msra.mxu0 %v2640_v10  ;;  %2105 = vmatpush3.bf16.msra.mxu1 %v2657_v30 }
 0x151   :  { %2076 = vmatprep.subr.bf16.mxu0 %v2642_v11  ;;  %2106 = vmatprep.subr.bf16.mxu1 %v2576_v0 }
 0x152   :  { %519 = vmatprep.mubr.f32.mxu0 %v2577_v1  ;;  %1781 = vmatprep.mubr.msk.f32.mxu1 %vm2578_vm0, %v2577_v1 }
 0x154   :  { %2078 = vmatpush1.bf16.msra.mxu0 %v2646_v16  ;;  %2108 = vmatpush3.bf16.msra.mxu1 %v2663_v35 }
 0x155   :  { %2080 = vmatprep.subr.bf16.mxu0 %v2649_v17  ;;  %2109 = vmatprep.subr.bf16.mxu1 %v2576_v0 }
 0x158   :  { %2082 = vmatpush1.bf16.msra.mxu0 %v2652_v22  ;;  %2111 = vmatpush3.bf16.msra.mxu1 %v2673_v44 }
 0x159   :  { %2084 = vmatprep.subr.bf16.mxu0 %v2655_v24  ;;  %2112 = vmatprep.subr.bf16.mxu1 %v2576_v0 }
 0x15c   :  { %2086 = vmatpush1.bf16.msra.mxu0 %v2660_v33  ;;  %2114 = vmatpush3.bf16.msra.mxu1 %v2691_v55 }
 0x15d   :  { %2088 = vmatprep.subr.bf16.mxu0 %v2666_v36  ;;  %2115 = vmatprep.subr.bf16.mxu1 %v2576_v0 }
 0x160   :  { %2090 = vmatpush1.bf16.msra.mxu0 %v2670_v42  ;;  %2117 = vmatpush3.bf16.msra.mxu1 %v2703_v4 }
 0x161   :  { %2092 = vmatprep.subr.bf16.mxu0 %v2681_v46  ;;  %2118 = vmatprep.subr.bf16.mxu1 %v2576_v0 }
 0x164   :  { %2094 = vmatpush1.bf16.msra.mxu0 %v2688_v53  ;;  %2120 = vmatpush3.bf16.msra.mxu1 %v2715_v14 }
 0x165   :  { %2096 = vmatprep.subr.bf16.mxu0 %v2695_v57  ;;  %2121 = vmatprep.subr.bf16.mxu1 %v2576_v0 }
 0x168   :  { %2098 = vmatpush1.bf16.msra.mxu0 %v2700_v63  ;;  %2123 = vmatpush3.bf16.msra.mxu1 %v2722_v20 }
 0x169   :  { %2100 = vmatprep.subr.bf16.mxu0 %v2707_v7  ;;  %2124 = vmatprep.subr.bf16.mxu1 %v2576_v0 }
 0x16c   :  { %2102 = vmatpush1.bf16.msra.mxu0 %v2712_v13  ;;  %2126 = vmatpush3.bf16.msra.mxu1 %v2728_v25 }
 0x16d   :  { %2128 = vmatprep.subr.bf16.mxu0 %v2638_v6  ;;  %2159 = vmatprep.subr.bf16.mxu1 %v2576_v0 }
 0x222   :  { %v345_v18 = vpop.f32.mrb[2].mxu0  ;;  %v416_v19 = vpop.f32.mrb[2].mxu1 }
 0x223   :  { %v420_v21 = vadd.f32 %v345_v18, %v276_v15  ;;  %v347_v23 = vpop.f32.mrb[3].mxu0  ;;  %v1748_v26 = vpop.f32.mrb[3].mxu1  ;;  %v434_v37 = vadd.f32 %v2772_v43, %v416_v19 }
 0x224   :  { %v427_v29 = vadd.f32 %v347_v23, %v277_v28  ;;  %v454_v26 = vld [vmem:[#allocation2 + $0x40] sm:$0xff] }
 0x225   :  { %v1529_v27 = vmul.f32 -1.442695, %v420_v21 }
 0x226   :  { %v1530_v31 = vmul.f32 -1.442695, %v427_v29 }
 0x227   :  { %2430 = vpow2.f32 %v1529_v27 }
 0x228   :  { %2432 = vpow2.f32 %v1530_v31 }
 0x231   :  { %v2431_v32 = vpop.eup %2430 }
 0x232   :  { %v424_v34 = vadd.f32 1.0, %v2431_v32  ;;  %v2433_v45 = vpop.eup %2432 }
 0x233   :  { %v431_v41 = vadd.f32 1.0, %v2433_v45  ;;  %v621_v45 = vpop.permute.xlu1 %620 }
 0x234   :  { %2434 = vrcp.f32 %v424_v34  ;;  %vm622_vm11 = vcmp.eq.s32.totalorder %v621_v45, 1 }
 0x23e   :  { %v2435_v2 = vpop.eup %2434 }
 0x23f   :  { %v435_v39 = vmul.f32 %v2435_v2, %v434_v37 }
 0x241   :  { %v436_v40 = vadd.f32 %v435_v39, %v278_v38 }
 0x243   :  { %2436 = vtanh.f32 %v436_v40  ;;  %v628_v40 = vld [vmem:[#allocation2 + $0x48] sm:$0xff] }
 0x244   :  { %2438 = vrcp.f32 %v431_v41 }
 0x24d   :  { %v2437_v47 = vpop.eup %2436 }
 0x24e   :  { %v438_v48 = vsub.f32 %v2775_v3, %v2437_v47  ;;  %v2439_v49 = vpop.eup %2438 }
 0x250   :  { %v439_v50 = vmul.f32 %v2439_v49, %v438_v48 }
 0x252   :  { %v440_v52 = vadd.f32 %v2437_v47, %v439_v50 }
 0x254   :  { %v447_v54 = vsel %vm446_vm10, %v440_v52, 0.0  ;;  %v2824_v56 = vsel %vm446_vm10, %v440_v52, %v2775_v3  ;;  %v629_v52 = vld [vmem:[#allocation2 + $0x50] sm:$0xff] }
 0x255   :  { %449 = vst [vmem:[#allocation7 + $0x8] sm:$0xff] %v447_v54  ;;  %520 = vmatmul.mubr.f32.vlgmr.msra.gmra.mrb[4].mxu0 %v2824_v56  ;;  %1782 = vmatmul.mubr.f32.vlgmr.msra.gmra.mrb[4].mxu1 %v2824_v56 }
 0x256   :  { %2130 = vmatpush1.bf16.msra.mxu0 %v2640_v10  ;;  %2161 = vmatpush3.bf16.msra.mxu1 %v2657_v30 }
 0x257   :  { %2132 = vmatprep.subr.bf16.mxu0 %v2642_v11  ;;  %2162 = vmatprep.subr.bf16.mxu1 %v2576_v0 }
 0x258   :  { %695 = vmatprep.mubr.f32.mxu0 %v2577_v1  ;;  %1816 = vmatprep.mubr.msk.f32.mxu1 %vm2578_vm0, %v2577_v1 }
 0x25a   :  { %2134 = vmatpush1.bf16.msra.mxu0 %v2646_v16  ;;  %2164 = vmatpush3.bf16.msra.mxu1 %v2663_v35 }
 0x25b   :  { %2136 = vmatprep.subr.bf16.mxu0 %v2649_v17  ;;  %2165 = vmatprep.subr.bf16.mxu1 %v2576_v0 }
 0x25e   :  { %2138 = vmatpush1.bf16.msra.mxu0 %v2652_v22  ;;  %2167 = vmatpush3.bf16.msra.mxu1 %v2673_v44 }
 0x25f   :  { %2140 = vmatprep.subr.bf16.mxu0 %v2655_v24  ;;  %2168 = vmatprep.subr.bf16.mxu1 %v2576_v0 }
 0x262   :  { %2142 = vmatpush1.bf16.msra.mxu0 %v2660_v33  ;;  %2170 = vmatpush3.bf16.msra.mxu1 %v2691_v55 }
 0x263   :  { %2144 = vmatprep.subr.bf16.mxu0 %v2666_v36  ;;  %2171 = vmatprep.subr.bf16.mxu1 %v2576_v0 }
 0x266   :  { %2146 = vmatpush1.bf16.msra.mxu0 %v2670_v42  ;;  %2173 = vmatpush3.bf16.msra.mxu1 %v2703_v4 }
 0x267   :  { %2148 = vmatprep.subr.bf16.mxu0 %v2681_v46  ;;  %2174 = vmatprep.subr.bf16.mxu1 %v2576_v0 }
 0x26a   :  { %2150 = vmatpush1.bf16.msra.mxu0 %v2688_v53  ;;  %2176 = vmatpush3.bf16.msra.mxu1 %v2715_v14 }
 0x26b   :  { %2152 = vmatprep.subr.bf16.mxu0 %v2695_v57  ;;  %2177 = vmatprep.subr.bf16.mxu1 %v2576_v0 }
 0x26e   :  { %2154 = vmatpush1.bf16.msra.mxu0 %v2700_v63  ;;  %2179 = vmatpush3.bf16.msra.mxu1 %v2722_v20 }
 0x26f   :  { %2156 = vmatprep.subr.bf16.mxu0 %v2707_v7  ;;  %2180 = vmatprep.subr.bf16.mxu1 %v2576_v0 }
 0x272   :  { %2158 = vmatpush1.bf16.msra.mxu0 %v2712_v13  ;;  %2182 = vmatpush3.bf16.msra.mxu1 %v2728_v25 }
 0x273   :  { %2184 = vmatprep.subr.bf16.mxu0 %v2638_v6  ;;  %2215 = vmatprep.subr.bf16.mxu1 %v2576_v0 }
 0x328   :  { %v521_v59 = vpop.f32.mrb[4].mxu0  ;;  %v592_v60 = vpop.f32.mrb[4].mxu1 }
 0x329   :  { %v596_v61 = vadd.f32 %v521_v59, %v452_v58  ;;  %v523_v62 = vpop.f32.mrb[5].mxu0  ;;  %v1783_v3 = vpop.f32.mrb[5].mxu1  ;;  %v610_v21 = vadd.f32 %v2772_v43, %v592_v60 }
 0x32a   :  { %v603_v9 = vadd.f32 %v523_v62, %v453_v8  ;;  %v630_v3 = vld [vmem:[#allocation2 + $0x58] sm:$0xff] }
 0x32b   :  { %v1531_v5 = vmul.f32 -1.442695, %v596_v61 }
 0x32c   :  { %v1532_v12 = vmul.f32 -1.442695, %v603_v9 }
 0x32d   :  { %2440 = vpow2.f32 %v1531_v5 }
 0x32e   :  { %2442 = vpow2.f32 %v1532_v12 }
 0x337   :  { %v2441_v15 = vpop.eup %2440 }
 0x338   :  { %v600_v18 = vadd.f32 1.0, %v2441_v15  ;;  %v2443_v19 = vpop.eup %2442 }
 0x339   :  { %v607_v29 = vadd.f32 1.0, %v2443_v19 }
 0x33a   :  { %2444 = vrcp.f32 %v600_v18 }
 0x344   :  { %v2445_v23 = vpop.eup %2444 }
 0x345   :  { %v611_v27 = vmul.f32 %v2445_v23, %v610_v21  ;;  %v797_v21 = vpop.permute.xlu1 %796 }
 0x346   :  { %vm798_vm12 = vcmp.eq.s32.totalorder %v797_v21, 1 }
 0x347   :  { %v612_v28 = vadd.f32 %v611_v27, %v454_v26 }
 0x349   :  { %2446 = vtanh.f32 %v612_v28  ;;  %v804_v28 = vld [vmem:[#allocation2 + $0x60] sm:$0xff] }
 0x34a   :  { %2448 = vrcp.f32 %v607_v29 }
 0x353   :  { %v2447_v31 = vpop.eup %2446 }
 0x354   :  { %v614_v32 = vsub.f32 %v2824_v56, %v2447_v31  ;;  %v2449_v34 = vpop.eup %2448 }
 0x356   :  { %v615_v37 = vmul.f32 %v2449_v34, %v614_v32 }
 0x358   :  { %v616_v2 = vadd.f32 %v2447_v31, %v615_v37 }
 0x35a   :  { %v623_v38 = vsel %vm622_vm11, %v616_v2, 0.0  ;;  %v2866_v39 = vsel %vm622_vm11, %v616_v2, %v2824_v56  ;;  %v805_v2 = vld [vmem:[#allocation2 + $0x68] sm:$0xff] }
 0x35b   :  { %625 = vst [vmem:[#allocation7 + $0x10] sm:$0xff] %v623_v38  ;;  %696 = vmatmul.mubr.f32.vlgmr.msra.gmra.mrb[6].mxu0 %v2866_v39  ;;  %1817 = vmatmul.mubr.f32.vlgmr.msra.gmra.mrb[6].mxu1 %v2866_v39 }
 0x35c   :  { %2186 = vmatpush1.bf16.msra.mxu0 %v2640_v10  ;;  %2217 = vmatpush3.bf16.msra.mxu1 %v2657_v30 }
 0x35d   :  { %2188 = vmatprep.subr.bf16.mxu0 %v2642_v11  ;;  %2218 = vmatprep.subr.bf16.mxu1 %v2576_v0 }
 0x35e   :  { %871 = vmatprep.mubr.f32.mxu0 %v2577_v1  ;;  %1851 = vmatprep.mubr.msk.f32.mxu1 %vm2578_vm0, %v2577_v1 }
 0x360   :  { %2190 = vmatpush1.bf16.msra.mxu0 %v2646_v16  ;;  %2220 = vmatpush3.bf16.msra.mxu1 %v2663_v35 }
 0x361   :  { %2192 = vmatprep.subr.bf16.mxu0 %v2649_v17  ;;  %2221 = vmatprep.subr.bf16.mxu1 %v2576_v0 }
 0x364   :  { %2194 = vmatpush1.bf16.msra.mxu0 %v2652_v22  ;;  %2223 = vmatpush3.bf16.msra.mxu1 %v2673_v44 }
 0x365   :  { %2196 = vmatprep.subr.bf16.mxu0 %v2655_v24  ;;  %2224 = vmatprep.subr.bf16.mxu1 %v2576_v0 }
 0x368   :  { %2198 = vmatpush1.bf16.msra.mxu0 %v2660_v33  ;;  %2226 = vmatpush3.bf16.msra.mxu1 %v2691_v55 }
 0x369   :  { %2200 = vmatprep.subr.bf16.mxu0 %v2666_v36  ;;  %2227 = vmatprep.subr.bf16.mxu1 %v2576_v0 }
 0x36c   :  { %2202 = vmatpush1.bf16.msra.mxu0 %v2670_v42  ;;  %2229 = vmatpush3.bf16.msra.mxu1 %v2703_v4 }
 0x36d   :  { %2204 = vmatprep.subr.bf16.mxu0 %v2681_v46  ;;  %2230 = vmatprep.subr.bf16.mxu1 %v2576_v0 }
 0x370   :  { %2206 = vmatpush1.bf16.msra.mxu0 %v2688_v53  ;;  %2232 = vmatpush3.bf16.msra.mxu1 %v2715_v14 }
 0x371   :  { %2208 = vmatprep.subr.bf16.mxu0 %v2695_v57  ;;  %2233 = vmatprep.subr.bf16.mxu1 %v2576_v0 }
 0x374   :  { %2210 = vmatpush1.bf16.msra.mxu0 %v2700_v63  ;;  %2235 = vmatpush3.bf16.msra.mxu1 %v2722_v20 }
 0x375   :  { %2212 = vmatprep.subr.bf16.mxu0 %v2707_v7  ;;  %2236 = vmatprep.subr.bf16.mxu1 %v2576_v0 }
 0x378   :  { %2214 = vmatpush1.bf16.msra.mxu0 %v2712_v13  ;;  %2238 = vmatpush3.bf16.msra.mxu1 %v2728_v25 }
 0x379   :  { %2240 = vmatprep.subr.bf16.mxu0 %v2638_v6  ;;  %2271 = vmatprep.subr.bf16.mxu1 %v2576_v0 }
 0x42e   :  { %v697_v41 = vpop.f32.mrb[6].mxu0  ;;  %v768_v47 = vpop.f32.mrb[6].mxu1 }
 0x42f   :  { %v772_v48 = vadd.f32 %v697_v41, %v628_v40  ;;  %v699_v49 = vpop.f32.mrb[7].mxu0  ;;  %v1818_v50 = vpop.f32.mrb[7].mxu1  ;;  %v786_v61 = vadd.f32 %v2772_v43, %v768_v47 }
 0x430   :  { %v779_v54 = vadd.f32 %v699_v49, %v629_v52  ;;  %v806_v50 = vld [vmem:[#allocation2 + $0x70] sm:$0xff] }
 0x431   :  { %v1533_v51 = vmul.f32 -1.442695, %v772_v48 }
 0x432   :  { %v1534_v56 = vmul.f32 -1.442695, %v779_v54 }
 0x433   :  { %2450 = vpow2.f32 %v1533_v51 }
 0x434   :  { %2452 = vpow2.f32 %v1534_v56 }
 0x43d   :  { %v2451_v58 = vpop.eup %2450 }
 0x43e   :  { %v776_v59 = vadd.f32 1.0, %v2451_v58  ;;  %v2453_v60 = vpop.eup %2452 }
 0x43f   :  { %v783_v9 = vadd.f32 1.0, %v2453_v60 }
 0x440   :  { %2454 = vrcp.f32 %v776_v59 }
 0x44a   :  { %v2455_v62 = vpop.eup %2454 }
 0x44b   :  { %v787_v5 = vmul.f32 %v2455_v62, %v786_v61  ;;  %v973_v61 = vpop.permute.xlu0 %972 }
 0x44c   :  { %vm974_vm13 = vcmp.eq.s32.totalorder %v973_v61, 1 }
 0x44d   :  { %v788_v8 = vadd.f32 %v787_v5, %v630_v3 }
 0x44f   :  { %2456 = vtanh.f32 %v788_v8  ;;  %v980_v8 = vld [vmem:[#allocation2 + $0x78] sm:$0xff] }
 0x450   :  { %2458 = vrcp.f32 %v783_v9 }
 0x459   :  { %v2457_v12 = vpop.eup %2456 }
 0x45a   :  { %v790_v15 = vsub.f32 %v2866_v39, %v2457_v12  ;;  %v2459_v18 = vpop.eup %2458 }
 0x45c   :  { %v791_v19 = vmul.f32 %v2459_v18, %v790_v15 }
 0x45e   :  { %v792_v23 = vadd.f32 %v2457_v12, %v791_v19 }
 0x460   :  { %v799_v26 = vsel %vm798_vm12, %v792_v23, 0.0  ;;  %v2908_v27 = vsel %vm798_vm12, %v792_v23, %v2866_v39  ;;  %v981_v23 = vld [vmem:[#allocation2 + $0x80] sm:$0xff] }
 0x461   :  { %801 = vst [vmem:[#allocation7 + $0x18] sm:$0xff] %v799_v26  ;;  %872 = vmatmul.mubr.f32.vlgmr.msra.gmra.mrb[8].mxu0 %v2908_v27  ;;  %1852 = vmatmul.mubr.f32.vlgmr.msra.gmra.mrb[8].mxu1 %v2908_v27 }
 0x462   :  { %2242 = vmatpush1.bf16.msra.mxu0 %v2640_v10  ;;  %2273 = vmatpush3.bf16.msra.mxu1 %v2657_v30 }
 0x463   :  { %2244 = vmatprep.subr.bf16.mxu0 %v2642_v11  ;;  %2274 = vmatprep.subr.bf16.mxu1 %v2576_v0 }
 0x464   :  { %1047 = vmatprep.mubr.f32.mxu0 %v2577_v1  ;;  %1886 = vmatprep.mubr.msk.f32.mxu1 %vm2578_vm0, %v2577_v1 }
 0x466   :  { %2246 = vmatpush1.bf16.msra.mxu0 %v2646_v16  ;;  %2276 = vmatpush3.bf16.msra.mxu1 %v2663_v35 }
 0x467   :  { %2248 = vmatprep.subr.bf16.mxu0 %v2649_v17  ;;  %2277 = vmatprep.subr.bf16.mxu1 %v2576_v0 }
 0x46a   :  { %2250 = vmatpush1.bf16.msra.mxu0 %v2652_v22  ;;  %2279 = vmatpush3.bf16.msra.mxu1 %v2673_v44 }
 0x46b   :  { %2252 = vmatprep.subr.bf16.mxu0 %v2655_v24  ;;  %2280 = vmatprep.subr.bf16.mxu1 %v2576_v0 }
 0x46e   :  { %2254 = vmatpush1.bf16.msra.mxu0 %v2660_v33  ;;  %2282 = vmatpush3.bf16.msra.mxu1 %v2691_v55 }
 0x46f   :  { %2256 = vmatprep.subr.bf16.mxu0 %v2666_v36  ;;  %2283 = vmatprep.subr.bf16.mxu1 %v2576_v0 }
 0x472   :  { %2258 = vmatpush1.bf16.msra.mxu0 %v2670_v42  ;;  %2285 = vmatpush3.bf16.msra.mxu1 %v2703_v4 }
 0x473   :  { %2260 = vmatprep.subr.bf16.mxu0 %v2681_v46  ;;  %2286 = vmatprep.subr.bf16.mxu1 %v2576_v0 }
 0x476   :  { %2262 = vmatpush1.bf16.msra.mxu0 %v2688_v53  ;;  %2288 = vmatpush3.bf16.msra.mxu1 %v2715_v14 }
 0x477   :  { %2264 = vmatprep.subr.bf16.mxu0 %v2695_v57  ;;  %2289 = vmatprep.subr.bf16.mxu1 %v2576_v0 }
 0x47a   :  { %2266 = vmatpush1.bf16.msra.mxu0 %v2700_v63  ;;  %2291 = vmatpush3.bf16.msra.mxu1 %v2722_v20 }
 0x47b   :  { %2268 = vmatprep.subr.bf16.mxu0 %v2707_v7  ;;  %2292 = vmatprep.subr.bf16.mxu1 %v2576_v0 }
 0x47e   :  { %2270 = vmatpush1.bf16.msra.mxu0 %v2712_v13  ;;  %2294 = vmatpush3.bf16.msra.mxu1 %v2728_v25 }
 0x47f   :  { %2296 = vmatprep.subr.bf16.mxu0 %v2638_v6  ;;  %2327 = vmatprep.subr.bf16.mxu1 %v2576_v0 }
 0x534   :  { %v873_v29 = vpop.f32.mrb[8].mxu0  ;;  %v944_v31 = vpop.f32.mrb[8].mxu1 }
 0x535   :  { %v948_v32 = vadd.f32 %v873_v29, %v804_v28  ;;  %v875_v34 = vpop.f32.mrb[9].mxu0  ;;  %v1853_v45 = vpop.f32.mrb[9].mxu1  ;;  %v962_v48 = vadd.f32 %v2772_v43, %v944_v31 }
 0x536   :  { %v955_v38 = vadd.f32 %v875_v34, %v805_v2  ;;  %v982_v34 = vld [vmem:[#allocation2 + $0x88] sm:$0xff] }
 0x537   :  { %v1535_v37 = vmul.f32 -1.442695, %v948_v32 }
 0x538   :  { %v1536_v39 = vmul.f32 -1.442695, %v955_v38 }
 0x539   :  { %2460 = vpow2.f32 %v1535_v37 }
 0x53a   :  { %2462 = vpow2.f32 %v1536_v39 }
 0x543   :  { %v2461_v40 = vpop.eup %2460 }
 0x544   :  { %v952_v41 = vadd.f32 1.0, %v2461_v40  ;;  %v2463_v47 = vpop.eup %2462 }
 0x545   :  { %v959_v54 = vadd.f32 1.0, %v2463_v47  ;;  %v1149_v47 = vpop.permute.xlu1 %1148 }
 0x546   :  { %2464 = vrcp.f32 %v952_v41  ;;  %vm1150_vm14 = vcmp.eq.s32.totalorder %v1149_v47, 1 }
 0x550   :  { %v2465_v49 = vpop.eup %2464 }
 0x551   :  { %v963_v51 = vmul.f32 %v2465_v49, %v962_v48 }
 0x553   :  { %v964_v52 = vadd.f32 %v963_v51, %v806_v50 }
 0x555   :  { %2466 = vtanh.f32 %v964_v52 }
 0x556   :  { %2468 = vrcp.f32 %v959_v54  ;;  %v1332_v54 = vld [vmem:[#allocation2 + $0xa8] sm:$0xff] }
 0x55f   :  { %v2467_v56 = vpop.eup %2466 }
 0x560   :  { %v966_v58 = vsub.f32 %v2908_v27, %v2467_v56  ;;  %v2469_v59 = vpop.eup %2468 }
 0x562   :  { %v967_v60 = vmul.f32 %v2469_v59, %v966_v58 }
 0x564   :  { %v968_v62 = vadd.f32 %v2467_v56, %v967_v60 }
 0x566   :  { %v975_v3 = vsel %vm974_vm13, %v968_v62, 0.0  ;;  %v2950_v5 = vsel %vm974_vm13, %v968_v62, %v2908_v27 }
 0x567   :  { %977 = vst [vmem:[#allocation7 + $0x20] sm:$0xff] %v975_v3  ;;  %1048 = vmatmul.mubr.f32.vlgmr.msra.gmra.mrb[10].mxu0 %v2950_v5  ;;  %1887 = vmatmul.mubr.f32.vlgmr.msra.gmra.mrb[10].mxu1 %v2950_v5  ;;  %v1333_v3 = vld [vmem:[#allocation2 + $0xb0] sm:$0xff] }
 0x568   :  { %2298 = vmatpush1.bf16.msra.mxu0 %v2640_v10  ;;  %2329 = vmatpush3.bf16.msra.mxu1 %v2657_v30 }
 0x569   :  { %2300 = vmatprep.subr.bf16.mxu0 %v2642_v11  ;;  %2330 = vmatprep.subr.bf16.mxu1 %v2576_v0 }
 0x56a   :  { %1223 = vmatprep.mubr.f32.mxu0 %v2577_v1  ;;  %1921 = vmatprep.mubr.msk.f32.mxu1 %vm2578_vm0, %v2577_v1 }
 0x56c   :  { %2302 = vmatpush1.bf16.msra.mxu0 %v2646_v16  ;;  %2332 = vmatpush3.bf16.msra.mxu1 %v2663_v35 }
 0x56d   :  { %2304 = vmatprep.subr.bf16.mxu0 %v2649_v17  ;;  %2333 = vmatprep.subr.bf16.mxu1 %v2576_v0 }
 0x570   :  { %2306 = vmatpush1.bf16.msra.mxu0 %v2652_v22  ;;  %2335 = vmatpush3.bf16.msra.mxu1 %v2673_v44 }
 0x571   :  { %2308 = vmatprep.subr.bf16.mxu0 %v2655_v24  ;;  %2336 = vmatprep.subr.bf16.mxu1 %v2576_v0 }
 0x574   :  { %2310 = vmatpush1.bf16.msra.mxu0 %v2660_v33  ;;  %2338 = vmatpush3.bf16.msra.mxu1 %v2691_v55 }
 0x575   :  { %2312 = vmatprep.subr.bf16.mxu0 %v2666_v36  ;;  %2339 = vmatprep.subr.bf16.mxu1 %v2576_v0 }
 0x578   :  { %2314 = vmatpush1.bf16.msra.mxu0 %v2670_v42  ;;  %2341 = vmatpush3.bf16.msra.mxu1 %v2703_v4 }
 0x579   :  { %2316 = vmatprep.subr.bf16.mxu0 %v2681_v46  ;;  %2342 = vmatprep.subr.bf16.mxu1 %v2576_v0 }
 0x57c   :  { %2318 = vmatpush1.bf16.msra.mxu0 %v2688_v53  ;;  %2344 = vmatpush3.bf16.msra.mxu1 %v2715_v14 }
 0x57d   :  { %2320 = vmatprep.subr.bf16.mxu0 %v2695_v57  ;;  %2345 = vmatprep.subr.bf16.mxu1 %v2576_v0 }
 0x580   :  { %2322 = vmatpush1.bf16.msra.mxu0 %v2700_v63  ;;  %2347 = vmatpush3.bf16.msra.mxu1 %v2722_v20 }
 0x581   :  { %2324 = vmatprep.subr.bf16.mxu0 %v2707_v7  ;;  %2348 = vmatprep.subr.bf16.mxu1 %v2576_v0 }
 0x584   :  { %2326 = vmatpush1.bf16.msra.mxu0 %v2712_v13  ;;  %2350 = vmatpush3.bf16.msra.mxu1 %v2728_v25 }
 0x585   :  { %2352 = vmatprep.subr.bf16.mxu0 %v2638_v6  ;;  %2383 = vmatprep.subr.bf16.mxu1 %v2576_v0 }
 0x63a   :  { %v1049_v9 = vpop.f32.mrb[10].mxu0  ;;  %v1120_v12 = vpop.f32.mrb[10].mxu1 }
 0x63b   :  { %v1124_v15 = vadd.f32 %v1049_v9, %v980_v8  ;;  %v1051_v18 = vpop.f32.mrb[11].mxu0  ;;  %v1888_v19 = vpop.f32.mrb[11].mxu1  ;;  %v1138_v6 = vadd.f32 %v2772_v43, %v1120_v12 }
 0x63c   :  { %v1131_v26 = vadd.f32 %v1051_v18, %v981_v23 }
 0x63d   :  { %v1537_v21 = vmul.f32 -1.442695, %v1124_v15 }
 0x63e   :  { %v1538_v27 = vmul.f32 -1.442695, %v1131_v26 }
 0x63f   :  { %2470 = vpow2.f32 %v1537_v21  ;;  %v1334_v21 = vld [vmem:[#allocation2 + $0xb8] sm:$0xff] }
 0x640   :  { %2472 = vpow2.f32 %v1538_v27 }
 0x649   :  { %v2471_v28 = vpop.eup %2470 }
 0x64a   :  { %v1128_v29 = vadd.f32 1.0, %v2471_v28  ;;  %v2473_v31 = vpop.eup %2472 }
 0x64b   :  { %v1135_v2 = vadd.f32 1.0, %v2473_v31 }
 0x64c   :  { %2474 = vrcp.f32 %v1128_v29 }
 0x656   :  { %v2475_v32 = vpop.eup %2474 }
 0x657   :  { %v1139_v45 = vmul.f32 %v2475_v32, %v1138_v6  ;;  %v1501_v6 = vpop.permute.xlu1 %1500 }
 0x659   :  { %v1140_v37 = vadd.f32 %v1139_v45, %v982_v34 }
 0x65b   :  { %2476 = vtanh.f32 %v1140_v37 }
 0x65c   :  { %2478 = vrcp.f32 %v1135_v2 }
 0x665   :  { %v2477_v38 = vpop.eup %2476 }
 0x666   :  { %v1142_v39 = vsub.f32 %v2950_v5, %v2477_v38  ;;  %v2479_v40 = vpop.eup %2478 }
 0x668   :  { %v1143_v41 = vmul.f32 %v2479_v40, %v1142_v39 }
 0x66a   :  { %v1144_v48 = vadd.f32 %v2477_v38, %v1143_v41 }
 0x66c   :  { %v1151_v49 = vsel %vm1150_vm14, %v1144_v48, 0.0  ;;  %v2992_v50 = vsel %vm1150_vm14, %v1144_v48, %v2950_v5 }
 0x66d   :  { %1153 = vst [vmem:[#allocation7 + $0x28] sm:$0xff] %v1151_v49  ;;  %1224 = vmatmul.mubr.f32.vlgmr.msra.gmra.mrb[12].mxu0 %v2992_v50  ;;  %1922 = vmatmul.mubr.f32.vlgmr.msra.gmra.mrb[12].mxu1 %v2992_v50 }
 0x66e   :  { %2354 = vmatpush1.bf16.msra.mxu0 %v2640_v10  ;;  %2385 = vmatpush3.bf16.msra.mxu1 %v2657_v30  ;;  %v1157_v30 = vld [vmem:[#allocation2 + $0x98] sm:$0xff] }
 0x66f   :  { %2356 = vmatprep.subr.bf16.mxu0 %v2642_v11  ;;  %2386 = vmatprep.subr.bf16.mxu1 %v2576_v0 }
 0x670   :  { %1399 = vmatprep.mubr.f32.mxu0 %v2577_v1  ;;  %1956 = vmatprep.mubr.msk.f32.mxu1 %vm2578_vm0, %v2577_v1  ;;  %v1156_v1 = vld [vmem:[#allocation2 + $0x90] sm:$0xff]  ;;  %vm1502_vm0 = vcmp.eq.s32.totalorder %v1501_v6, 1 }
 0x672   :  { %2358 = vmatpush1.bf16.msra.mxu0 %v2646_v16  ;;  %2388 = vmatpush3.bf16.msra.mxu1 %v2663_v35 }
 0x673   :  { %2360 = vmatprep.subr.bf16.mxu0 %v2649_v17  ;;  %2389 = vmatprep.subr.bf16.mxu1 %v2576_v0 }
 0x676   :  { %2362 = vmatpush1.bf16.msra.mxu0 %v2652_v22  ;;  %2391 = vmatpush3.bf16.msra.mxu1 %v2673_v44 }
 0x677   :  { %2364 = vmatprep.subr.bf16.mxu0 %v2655_v24  ;;  %2392 = vmatprep.subr.bf16.mxu1 %v2576_v0 }
 0x67a   :  { %2366 = vmatpush1.bf16.msra.mxu0 %v2660_v33  ;;  %2394 = vmatpush3.bf16.msra.mxu1 %v2691_v55 }
 0x67b   :  { %2368 = vmatprep.subr.bf16.mxu0 %v2666_v36  ;;  %2395 = vmatprep.subr.bf16.mxu1 %v2576_v0 }
 0x67e   :  { %2370 = vmatpush1.bf16.msra.mxu0 %v2670_v42  ;;  %2397 = vmatpush3.bf16.msra.mxu1 %v2703_v4 }
 0x67f   :  { %2372 = vmatprep.subr.bf16.mxu0 %v2681_v46  ;;  %2398 = vmatprep.subr.bf16.mxu1 %v2576_v0 }
 0x682   :  { %2374 = vmatpush1.bf16.msra.mxu0 %v2688_v53  ;;  %2400 = vmatpush3.bf16.msra.mxu1 %v2715_v14  ;;  %v1158_v53 = vld [vmem:[#allocation2 + $0xa0] sm:$0xff]  ;;  %v1325_v14 = vpop.permute.xlu0 %1324 }
 0x683   :  { %2376 = vmatprep.subr.bf16.mxu0 %v2695_v57  ;;  %2401 = vmatprep.subr.bf16.mxu1 %v2576_v0  ;;  %vm1326_vm15 = vcmp.eq.s32.totalorder %v1325_v14, 1 }
 0x686   :  { %2378 = vmatpush1.bf16.msra.mxu0 %v2700_v63  ;;  %2403 = vmatpush3.bf16.msra.mxu1 %v2722_v20 }
 0x687   :  { %2380 = vmatprep.subr.bf16.mxu0 %v2707_v7  ;;  %2404 = vmatprep.subr.bf16.mxu1 %v2576_v0 }
 0x68a   :  { %2382 = vmatpush1.bf16.msra.mxu0 %v2712_v13  ;;  %2406 = vmatpush3.bf16.msra.mxu1 %v2728_v25 }
 0x740   :  { %v1225_v10 = vpop.f32.mrb[12].mxu0  ;;  %v1296_v11 = vpop.f32.mrb[12].mxu1 }
 0x741   :  { %v1300_v16 = vadd.f32 %v1225_v10, %v1156_v1  ;;  %v1227_v17 = vpop.f32.mrb[13].mxu0  ;;  %v1923_v22 = vpop.f32.mrb[13].mxu1  ;;  %v1314_v44 = vadd.f32 %v2772_v43, %v1296_v11 }
 0x742   :  { %v1307_v33 = vadd.f32 %v1227_v17, %v1157_v30 }
 0x743   :  { %v1539_v24 = vmul.f32 -1.442695, %v1300_v16 }
 0x744   :  { %v1540_v35 = vmul.f32 -1.442695, %v1307_v33 }
 0x745   :  { %2480 = vpow2.f32 %v1539_v24 }
 0x746   :  { %2482 = vpow2.f32 %v1540_v35 }
 0x74f   :  { %v2481_v36 = vpop.eup %2480 }
 0x750   :  { %v1304_v42 = vadd.f32 1.0, %v2481_v36  ;;  %v2483_v0 = vpop.eup %2482 }
 0x751   :  { %v1311_v63 = vadd.f32 1.0, %v2483_v0 }
 0x752   :  { %2484 = vrcp.f32 %v1304_v42 }
 0x75c   :  { %v2485_v46 = vpop.eup %2484 }
 0x75d   :  { %v1315_v55 = vmul.f32 %v2485_v46, %v1314_v44 }
 0x75f   :  { %v1316_v57 = vadd.f32 %v1315_v55, %v1158_v53 }
 0x761   :  { %2486 = vtanh.f32 %v1316_v57 }
 0x762   :  { %2488 = vrcp.f32 %v1311_v63 }
 0x76b   :  { %v2487_v4 = vpop.eup %2486 }
 0x76c   :  { %v1318_v7 = vsub.f32 %v2992_v50, %v2487_v4  ;;  %v2489_v13 = vpop.eup %2488 }
 0x76e   :  { %v1319_v20 = vmul.f32 %v2489_v13, %v1318_v7 }
 0x770   :  { %v1320_v25 = vadd.f32 %v2487_v4, %v1319_v20 }
 0x772   :  { %v1327_v51 = vsel %vm1326_vm15, %v1320_v25, 0.0  ;;  %v1330_v52 = vsel %vm1326_vm15, %v1320_v25, %v2992_v50 }
 0x773   :  { %1329 = vst [vmem:[#allocation7 + $0x30] sm:$0xff] %v1327_v51  ;;  %1400 = vmatmul.mubr.f32.vlgmr.msra.gmra.mrb[14].mxu0 %v1330_v52  ;;  %1957 = vmatmul.mubr.f32.vlgmr.msra.gmra.mrb[14].mxu1 %v1330_v52 }
 0x846   :  { %v1401_v56 = vpop.f32.mrb[14].mxu0  ;;  %v1472_v58 = vpop.f32.mrb[14].mxu1 }
 0x847   :  { %v1476_v59 = vadd.f32 %v1401_v56, %v1332_v54  ;;  %v1403_v60 = vpop.f32.mrb[15].mxu0  ;;  %v1958_v61 = vpop.f32.mrb[15].mxu1  ;;  %v1490_v18 = vadd.f32 %v2772_v43, %v1472_v58 }
 0x848   :  { %v1483_v5 = vadd.f32 %v1403_v60, %v1333_v3 }
 0x849   :  { %v1541_v62 = vmul.f32 -1.442695, %v1476_v59 }
 0x84a   :  { %v1542_v8 = vmul.f32 -1.442695, %v1483_v5 }
 0x84b   :  { %2490 = vpow2.f32 %v1541_v62 }
 0x84c   :  { %2492 = vpow2.f32 %v1542_v8 }
 0x855   :  { %v2491_v9 = vpop.eup %2490 }
 0x856   :  { %v1480_v12 = vadd.f32 1.0, %v2491_v9  ;;  %v2493_v15 = vpop.eup %2492 }
 0x857   :  { %v1487_v27 = vadd.f32 1.0, %v2493_v15 }
 0x858   :  { %2494 = vrcp.f32 %v1480_v12 }
 0x862   :  { %v2495_v19 = vpop.eup %2494 }
 0x863   :  { %v1491_v23 = vmul.f32 %v2495_v19, %v1490_v18 }
 0x865   :  { %v1492_v26 = vadd.f32 %v1491_v23, %v1334_v21 }
 0x867   :  { %2496 = vtanh.f32 %v1492_v26 }
 0x868   :  { %2498 = vrcp.f32 %v1487_v27 }
 0x871   :  { %v2497_v28 = vpop.eup %2496 }
 0x872   :  { %v1494_v29 = vsub.f32 %v1330_v52, %v2497_v28  ;;  %v2499_v31 = vpop.eup %2498 }
 0x874   :  { %v1495_v32 = vmul.f32 %v2499_v31, %v1494_v29 }
 0x876   :  { %v1496_v34 = vadd.f32 %v2497_v28, %v1495_v32 }
 0x878   :  { %v1503_v45 = vsel %vm1502_vm0, %v1496_v34, 0.0 }
 0x879   :  { %1505 = vst [vmem:[#allocation7 + $0x38] sm:$0xff] %v1503_v45 }
 0x87a   :  { %2555 = shalt.err (!%p2552_p6)
}
 0x87b   :  { %s2556_s20 = scalar_lea.hbm %s3049_s4, 1024 }
 0x87c   :  { %p2557_p7 = scmp.ne.s32.totalorder %s3049_s4, %s2556_s20  ;;  %p2560_p8 = scmp.lt.u32.totalorder %s2556_s20, %s3049_s4 }
 0x87e   :  { %p2562_p9 = pnand %p2560_p8, %p2557_p7 }
 0x880   :  { %2565 = shalt.err (!%p2562_p9)
}
 0x881   :  { %s2581_s25 = smov 128   ;;  %s2582_s26 = smov 8  }
 0x882   :  { %1517 = dma.vmem_to_hbm [thread:$0]  %s1512_s16, 1024, %s3049_s4, [#allocation4], %s2581_s25, %s2581_s25, %s2582_s26  }
 0x883   :  { %2570 = dma.done.wait [#allocation4], 1024  }
 0x884   :  { %2571 = vsyncadd [#allocation4], 4294966272 }
 0x885   :  { %1521 = vsyncpa [#allocation3], 1 }
 0x886   :  { %1522 = vsyncpa [#allocation6], 1 }
 0x887   :  { %1523 = vsyncpa [#allocation4], 1 }

</bundles_post_ra>
